<compile_context>
chip_gen: v7x
topology: tpu7x:2x2x1
jax: 0.10.0
libtpu: 0.0.40
codegen_flags: <defaults>
</compile_context>

<pallas_src>
import math
import numpy as np
import jax
import jax.numpy as jnp
from jax import lax
from jax.experimental import pallas as pl
from jax.experimental.pallas import tpu as pltpu

# ---------------------------- toy model config ----------------------------
B = 2                         # batch
IN_CH = 3                     # image channels
IMG = 16                      # image size
PATCH = 8                     # patch size  -> 2x2 = 4 patches
GRID_SIZE = IMG // PATCH
NUM_PATCHES = GRID_SIZE * GRID_SIZE
N = NUM_PATCHES + 1           # tokens (cls + patches) = 5
N_PAD = 8                     # tokens zero-padded to a sublane multiple
DIM = 32                      # embedding dim
NUM_HEADS = 4
HEAD_DIM = DIM // NUM_HEADS   # 8
MLP_HIDDEN = int(DIM * 4.0)   # 128
DEPTH = 2                     # small stand-in for depth=12; kernel loops layers
NUM_CLASSES = 2
BN = B * N_PAD                # 16 rows resident in VMEM

SCALE = HEAD_DIM ** (-0.5)
LN_EPS = 1e-6                 # VisionTransformer uses partial(nn.LayerNorm, eps=1e-6)
THETA_MSA = 0.1               # self.theta_msa init value (proj perturbation coef)
PD_COEF = 0.1                 # fixed 0.1 coefficient on the qkv perturbation
INV_SQRT2 = 1.0 / math.sqrt(2.0)


# ------------------------------ kernel helpers -----------------------------
def _layernorm(z, gamma, beta):
    mu = jnp.mean(z, axis=-1, keepdims=True)
    var = jnp.mean((z - mu) ** 2, axis=-1, keepdims=True)
    return (z - mu) * lax.rsqrt(var + LN_EPS) * gamma + beta


def _gelu_erf(x):
    # exact-erf GELU (nn.GELU default) via Abramowitz & Stegun 7.1.26
    # (|erf error| < 1.5e-7); only exp/mul/add/div/select -> lowers everywhere.
    z = jnp.abs(x) * INV_SQRT2
    t = 1.0 / (1.0 + 0.3275911 * z)
    poly = t * (0.254829592 + t * (-0.284496736 + t * (1.421413741
             + t * (-1.453152027 + t * 1.061405429))))
    erf_z = 1.0 - poly * jnp.exp(-z * z)
    erf_x = jnp.where(x >= 0.0, erf_z, -erf_z)
    return 0.5 * x * (1.0 + erf_x)


# ---------------------------------- kernel ---------------------------------
def _vit_kernel(x_ref, mask_ref,
                g1_ref, beta1_ref, g2_ref, beta2_ref,
                wqkv_ref, bqkv_ref, wproj_ref, bproj_ref,
                w1_ref, b1_ref, w2_ref, b2_ref,
                gf_ref, betaf_ref, wh_ref, bh_ref,
                o_ref, ctx_ref):
    x = x_ref[...]            # (BN, DIM) activations, resident across all layers
    mask = mask_ref[...]      # (BN, BN) block-diagonal / pad mask, built once

    for l in range(DEPTH):    # unrolled layer loop: no launches, no HBM round-trips
        # ---------------- LayerNorm 1 ----------------
        xn = _layernorm(x, g1_ref[l], beta1_ref[l])

        # ---------------- Attention: ONE fused QKV matmul ----------------
        # (attention scale already folded into the Q third of wqkv/bqkv)
        qkv = jnp.dot(xn, wqkv_ref[l], preferred_element_type=jnp.float32) + bqkv_ref[l]

        for h in range(NUM_HEADS):          # unrolled; per-head = slices + 2 small matmuls
            q = qkv[:, h * HEAD_DIM:(h + 1) * HEAD_DIM]
            k = qkv[:, DIM + h * HEAD_DIM:DIM + (h + 1) * HEAD_DIM]
            v = qkv[:, 2 * DIM + h * HEAD_DIM:2 * DIM + (h + 1) * HEAD_DIM]

            # scores: contract last dims directly (no k.T materialization)
            s = lax.dot_general(q, k, (((1,), (1,)), ((), ())),
                                preferred_element_type=jnp.float32) + mask
            s = s - jnp.max(s, axis=-1, keepdims=True)
            p = jnp.exp(s)
            p = p / jnp.sum(p, axis=-1, keepdims=True)

            # drop this head's context into its 8-lane slot of the scratch
            ctx_ref[:, h * HEAD_DIM:(h + 1) * HEAD_DIM] = jnp.dot(
                p, v, preferred_element_type=jnp.float32)

        # single output projection over the assembled (BN, DIM) context
        attn_out = jnp.dot(ctx_ref[...], wproj_ref[l],
                           preferred_element_type=jnp.float32) + bproj_ref[l]
        x = x + attn_out                    # residual 1 (ls1/drop_path1 == Identity)

        # ---------------- LayerNorm 2 + MLP ----------------
        xn2 = _layernorm(x, g2_ref[l], beta2_ref[l])
        h1 = jnp.dot(xn2, w1_ref[l], preferred_element_type=jnp.float32) + b1_ref[l]
        h1 = _gelu_erf(h1)
        x = x + jnp.dot(h1, w2_ref[l], preferred_element_type=jnp.float32) + b2_ref[l]

    # ------- final LayerNorm + classifier head (logits for every token row;
    #         the wrapper picks the cls rows) -------
    xf = _layernorm(x, gf_ref[...], betaf_ref[...])
    o_ref[...] = jnp.dot(xf, wh_ref[...], preferred_element_type=jnp.float32) + bh_ref[...]


# ----------------------------- JAX-glue wrapper -----------------------------
def embed_tokens(img, p):
    """PatchEmbed (stride=patch Conv2d == reshape+matmul) + cls token + pos embed."""
    b, c, hh, ww = img.shape
    gh, gw = hh // PATCH, ww // PATCH
    xp = img.reshape(b, c, gh, PATCH, gw, PATCH)
    xp = xp.transpose(0, 2, 4, 1, 3, 5).reshape(b, gh * gw, c * PATCH * PATCH)
    patches = xp @ p["w_patch"] + p["b_patch"]                      # (B, P, DIM)
    cls = jnp.broadcast_to(p["cls_token"], (b, 1, DIM))
    tok = jnp.concatenate([cls, patches], axis=1)                   # (B, N, DIM)
    return tok + p["pos_embed"]


def vit_forward_pallas(img, p):
    tok = embed_tokens(img, p)                                      # (B, N, DIM)
    # zero-pad tokens to a sublane multiple; pad columns masked in attention,
    # pad rows discarded after the kernel.
    x = jnp.zeros((B, N_PAD, DIM), jnp.float32).at[:, :N, :].set(tok)
    x2d = x.reshape(BN, DIM)

    # block-diagonal attention mask (also masks pad-token columns); built once
    # wrapper-side and passed in (fixes the captured-constant error, and avoids
    # rebuilding it inside every fused layer).
    row_b = jnp.arange(BN)[:, None] // N_PAD
    col_b = jnp.arange(BN)[None, :] // N_PAD
    col_ok = (jnp.arange(BN) % N_PAD < N)[None, :]
    mask = jnp.where((row_b == col_b) & col_ok, 0.0, -1e30).astype(jnp.float32)

    vmem = pl.BlockSpec(memory_space=pltpu.MemorySpace.VMEM)
    logits_all = pl.pallas_call(
        _vit_kernel,
        out_shape=jax.ShapeDtypeStruct((BN, NUM_CLASSES), jnp.float32),
        in_specs=[vmem] * 18,
        out_specs=vmem,
        scratch_shapes=[pltpu.VMEM((BN, DIM), jnp.float32)],
        # single grid-free invocation: whole working set (activations + all
        # layer weights, well under 1 MB at this config) stays in VMEM.
    )(x2d, mask,
      p["g1"], p["beta1"], p["g2"], p["beta2"],
      p["wqkv"], p["bqkv"], p["wproj"], p["bproj"],
      p["w1"], p["b1"], p["w2"], p["b2"],
      p["gf"], p["betaf"], p["w_head"], p["b_head"])
    return logits_all[0::N_PAD]                                     # cls logits (B, NC)


# --------------------------- parameter construction -------------------------
def make_params(key):
    keys = jax.random.split(key, 6 + DEPTH)
    std = 0.02

    # patch embed: torch Conv2d weight (D, C, P, P) -> matmul layout (C*P*P, D)
    w_patch_t = jax.random.normal(keys[0], (DIM, IN_CH, PATCH, PATCH), jnp.float32) * std
    b_patch = jax.random.normal(keys[1], (DIM,), jnp.float32) * std
    cls_token = jax.random.normal(keys[2], (1, 1, DIM), jnp.float32) * 1e-6
    pos_embed = jax.random.normal(keys[3], (1, N, DIM), jnp.float32) * std
    w_head_t = jax.random.normal(keys[4], (NUM_CLASSES, DIM), jnp.float32) * std
    b_head = jnp.zeros((NUM_CLASSES,), jnp.float32)

    # stand-in for torch.randperm(dim) with seed 3407 (same perm in every block,
    # since the torch module reseeds inside each Attention.__init__)
    perm = jax.random.permutation(keys[5], DIM)

    # attention scale folded into the Q third of the fused QKV weight & bias
    scale_vec = jnp.concatenate([jnp.full((DIM,), SCALE, jnp.float32),
                                 jnp.ones((DIM,), jnp.float32),
                                 jnp.ones((DIM,), jnp.float32)])

    wqkv_l, bqkv_l, wqkv_ref_l, bqkv_ref_l = [], [], [], []
    wproj_l, bproj_l, w1_l, b1_l, w2_l, b2_l = [], [], [], [], [], []
    for l in range(DEPTH):
        ks = jax.random.split(keys[6 + l], 8)
        # PyTorch nn.Linear weights are (out, in); F.linear does x @ W.T.
        wqkv_t = jax.random.normal(ks[0], (3 * DIM, DIM), jnp.float32) * std
        bqkv = jax.random.normal(ks[1], (3 * DIM,), jnp.float32) * std      # qkv_bias=True
        wproj_t = jax.random.normal(ks[2], (DIM, DIM), jnp.float32) * std
        bproj = jax.random.normal(ks[3], (DIM,), jnp.float32) * std
        w1_t = jax.random.normal(ks[4], (MLP_HIDDEN, DIM), jnp.float32) * std
        b1 = jax.random.normal(ks[5], (MLP_HIDDEN,), jnp.float32) * std
        w2_t = jax.random.normal(ks[6], (DIM, MLP_HIDDEN), jnp.float32) * std
        b2 = jax.random.normal(ks[7], (DIM,), jnp.float32) * std

        # W_eff = W + coef * (W - W[:, perm]) on the (out, in) layout
        wqkv_eff_t = wqkv_t + PD_COEF * (wqkv_t - wqkv_t[:, perm])
        wproj_eff_t = wproj_t + THETA_MSA * (wproj_t - wproj_t[:, perm])

        wqkv_eff = wqkv_eff_t.T                    # (DIM, 3*DIM): x @ W layout
        wproj_eff = wproj_eff_t.T                  # (DIM, DIM)

        wqkv_ref_l.append(wqkv_eff)
        bqkv_ref_l.append(bqkv)
        wqkv_l.append(wqkv_eff * scale_vec[None, :])   # kernel: scale folded
        bqkv_l.append(bqkv * scale_vec)
        wproj_l.append(wproj_eff)
        bproj_l.append(bproj)
        w1_l.append(w1_t.T); b1_l.append(b1)
        w2_l.append(w2_t.T); b2_l.append(b2)

    stack = lambda xs: jnp.stack(xs, axis=0)
    return {
        # wrapper-side preprocessing params
        "w_patch": w_patch_t.reshape(DIM, IN_CH * PATCH * PATCH).T,
        "b_patch": b_patch, "cls_token": cls_token, "pos_embed": pos_embed,
        # per-layer LayerNorm params (stacked over layers)
        "g1": jnp.ones((DEPTH, 1, DIM), jnp.float32),
        "beta1": jnp.zeros((DEPTH, 1, DIM), jnp.float32),
        "g2": jnp.ones((DEPTH, 1, DIM), jnp.float32),
        "beta2": jnp.zeros((DEPTH, 1, DIM), jnp.float32),
        # kernel-side fused / scale-folded attention + MLP weights (stacked)
        "wqkv": stack(wqkv_l), "bqkv": stack(bqkv_l)[:, None, :],
        "wproj": stack(wproj_l), "bproj": stack(bproj_l)[:, None, :],
        "w1": stack(w1_l), "b1": stack(b1_l)[:, None, :],
        "w2": stack(w2_l), "b2": stack(b2_l)[:, None, :],
        # final norm + classifier head
        "gf": jnp.ones((1, DIM), jnp.float32),
        "betaf": jnp.zeros((1, DIM), jnp.float32),
        "w_head": w_head_t.T, "b_head": b_head[None, :],
        # reference-side (unscaled) effective qkv weights/biases
        "wqkv_ref": stack(wqkv_ref_l), "bqkv_ref": stack(bqkv_ref_l),
    }


# ------------------------------ pure-JAX reference --------------------------
def vit_forward_ref(img, p):
    def ln(z, g, b):
        mu = jnp.mean(z, -1, keepdims=True)
        var = jnp.mean((z - mu) ** 2, -1, keepdims=True)
        return (z - mu) / jnp.sqrt(var + LN_EPS) * g + b

    x = embed_tokens(img, p)                                        # (B, N, DIM)
    for l in range(DEPTH):
        xn = ln(x, p["g1"][l, 0], p["beta1"][l, 0])
        qkv = xn @ p["wqkv_ref"][l] + p["bqkv_ref"][l]
        qkv = qkv.reshape(B, N, 3, NUM_HEADS, HEAD_DIM).transpose(2, 0, 3, 1, 4)
        q, k, v = qkv[0], qkv[1], qkv[2]                            # (B, H, N, hd)
        attn = jnp.einsum("bhqd,bhkd->bhqk", q, k) * SCALE
        attn = jax.nn.softmax(attn, axis=-1)
        out = jnp.einsum("bhqk,bhkd->bhqd", attn, v)
        out = out.transpose(0, 2, 1, 3).reshape(B, N, DIM)
        x = x + (out @ p["wproj"][l] + p["bproj"][l, 0])
        xn2 = ln(x, p["g2"][l, 0], p["beta2"][l, 0])
        h = jax.nn.gelu(xn2 @ p["w1"][l] + p["b1"][l, 0], approximate=False)
        x = x + (h @ p["w2"][l] + p["b2"][l, 0])
    x = ln(x, p["gf"][0], p["betaf"][0])
    return x[:, 0] @ p["w_head"] + p["b_head"][0]                   # (B, NUM_CLASSES)


if __name__ == "__main__":
    key = jax.random.PRNGKey(0)
    kimg, kparam = jax.random.split(key)
    img = jax.random.normal(kimg, (B, IN_CH, IMG, IMG), jnp.float32)
    params = make_params(kparam)

    logits = vit_forward_pallas(img, params)
    logits = jax.block_until_ready(logits)

    ref = vit_forward_ref(img, params)
    np.testing.assert_allclose(np.asarray(logits), np.asarray(ref), rtol=2e-3, atol=2e-3)
    print("KERNEL_OK")
</pallas_src>

<mosaic_0001>
module attributes {stable_mosaic.version = 11 : i64} {
  func.func @_vit_kernel(%arg0: memref<16x32xf32, #tpu.memory_space<vmem>>, %arg1: memref<16x16xf32, #tpu.memory_space<vmem>>, %arg2: memref<2x1x32xf32, #tpu.memory_space<vmem>>, %arg3: memref<2x1x32xf32, #tpu.memory_space<vmem>>, %arg4: memref<2x1x32xf32, #tpu.memory_space<vmem>>, %arg5: memref<2x1x32xf32, #tpu.memory_space<vmem>>, %arg6: memref<2x32x96xf32, #tpu.memory_space<vmem>>, %arg7: memref<2x1x96xf32, #tpu.memory_space<vmem>>, %arg8: memref<2x32x32xf32, #tpu.memory_space<vmem>>, %arg9: memref<2x1x32xf32, #tpu.memory_space<vmem>>, %arg10: memref<2x32x128xf32, #tpu.memory_space<vmem>>, %arg11: memref<2x1x128xf32, #tpu.memory_space<vmem>>, %arg12: memref<2x128x32xf32, #tpu.memory_space<vmem>>, %arg13: memref<2x1x32xf32, #tpu.memory_space<vmem>>, %arg14: memref<1x32xf32, #tpu.memory_space<vmem>>, %arg15: memref<1x32xf32, #tpu.memory_space<vmem>>, %arg16: memref<32x2xf32, #tpu.memory_space<vmem>>, %arg17: memref<1x2xf32, #tpu.memory_space<vmem>>, %arg18: memref<16x2xf32, #tpu.memory_space<vmem>>, %arg19: memref<16x32xf32, #tpu.memory_space<vmem>>) attributes {dimension_semantics = [], scalar_prefetch = 0 : i64, scratch_operands = 1 : i64, tpu.core_type = #tpu.core_type<tc>} {
    %c0 = arith.constant 0 : index
    %c0_0 = arith.constant 0 : index
    %0 = vector.load %arg0[%c0, %c0_0] : memref<16x32xf32, #tpu.memory_space<vmem>>, vector<16x32xf32>
    %c0_1 = arith.constant 0 : index
    %c0_2 = arith.constant 0 : index
    %1 = vector.load %arg1[%c0_1, %c0_2] : memref<16x16xf32, #tpu.memory_space<vmem>>, vector<16x16xf32>
    %c0_3 = arith.constant 0 : index
    %c0_4 = arith.constant 0 : index
    %c0_5 = arith.constant 0 : index
    %2 = vector.load %arg2[%c0_3, %c0_4, %c0_5] : memref<2x1x32xf32, #tpu.memory_space<vmem>>, vector<1x1x32xf32>
    %3 = vector.shape_cast %2 : vector<1x1x32xf32> to vector<1x32xf32>
    %c0_6 = arith.constant 0 : index
    %c0_7 = arith.constant 0 : index
    %c0_8 = arith.constant 0 : index
    %4 = vector.load %arg3[%c0_6, %c0_7, %c0_8] : memref<2x1x32xf32, #tpu.memory_space<vmem>>, vector<1x1x32xf32>
    %5 = vector.shape_cast %4 : vector<1x1x32xf32> to vector<1x32xf32>
    %cst = arith.constant dense<0.000000e+00> : vector<16xf32>
    %6 = vector.multi_reduction <add>, %0, %cst [1] : vector<16x32xf32> to vector<16xf32>
    %7 = vector.shape_cast %6 : vector<16xf32> to vector<16x1xf32>
    %cst_9 = arith.constant 3.200000e+01 : f32
    %8 = vector.broadcast %cst_9 : f32 to vector<16x1xf32>
    %9 = arith.divf %7, %8 : vector<16x1xf32>
    %10 = vector.broadcast %9 : vector<16x1xf32> to vector<16x32xf32>
    %11 = arith.subf %0, %10 : vector<16x32xf32>
    %12 = arith.mulf %11, %11 : vector<16x32xf32>
    %cst_10 = arith.constant dense<0.000000e+00> : vector<16xf32>
    %13 = vector.multi_reduction <add>, %12, %cst_10 [1] : vector<16x32xf32> to vector<16xf32>
    %14 = vector.shape_cast %13 : vector<16xf32> to vector<16x1xf32>
    %cst_11 = arith.constant 3.200000e+01 : f32
    %15 = vector.broadcast %cst_11 : f32 to vector<16x1xf32>
    %16 = arith.divf %14, %15 : vector<16x1xf32>
    %17 = vector.broadcast %9 : vector<16x1xf32> to vector<16x32xf32>
    %18 = arith.subf %0, %17 : vector<16x32xf32>
    %cst_12 = arith.constant 9.99999997E-7 : f32
    %19 = vector.broadcast %cst_12 : f32 to vector<16x1xf32>
    %20 = arith.addf %16, %19 : vector<16x1xf32>
    %21 = math.rsqrt %20 : vector<16x1xf32>
    %22 = vector.broadcast %21 : vector<16x1xf32> to vector<16x32xf32>
    %23 = arith.mulf %18, %22 : vector<16x32xf32>
    %24 = vector.broadcast %3 : vector<1x32xf32> to vector<16x32xf32>
    %25 = arith.mulf %23, %24 : vector<16x32xf32>
    %26 = vector.broadcast %5 : vector<1x32xf32> to vector<16x32xf32>
    %27 = arith.addf %25, %26 : vector<16x32xf32>
    %c0_13 = arith.constant 0 : index
    %c0_14 = arith.constant 0 : index
    %c0_15 = arith.constant 0 : index
    %28 = vector.load %arg6[%c0_13, %c0_14, %c0_15] : memref<2x32x96xf32, #tpu.memory_space<vmem>>, vector<1x32x96xf32>
    %29 = vector.shape_cast %28 : vector<1x32x96xf32> to vector<32x96xf32>
    %cst_16 = arith.constant dense<0.000000e+00> : vector<16x96xf32>
    %30 = tpu.matmul %27, %29, %cst_16 {dimension_numbers = #tpu.dot_dimension_numbers<[1], [0], [0], [1], [0, 0, 1, 1], [], []>} : vector<16x32xf32>, vector<32x96xf32>, vector<16x96xf32> -> vector<16x96xf32>
    %c0_17 = arith.constant 0 : index
    %c0_18 = arith.constant 0 : index
    %c0_19 = arith.constant 0 : index
    %31 = vector.load %arg7[%c0_17, %c0_18, %c0_19] : memref<2x1x96xf32, #tpu.memory_space<vmem>>, vector<1x1x96xf32>
    %32 = vector.shape_cast %31 : vector<1x1x96xf32> to vector<1x96xf32>
    %33 = vector.broadcast %32 : vector<1x96xf32> to vector<16x96xf32>
    %34 = arith.addf %30, %33 : vector<16x96xf32>
    %35 = vector.extract_strided_slice %34 {offsets = [0, 0], sizes = [16, 8], strides = [1, 1]} : vector<16x96xf32> to vector<16x8xf32>
    %36 = vector.extract_strided_slice %34 {offsets = [0, 32], sizes = [16, 8], strides = [1, 1]} : vector<16x96xf32> to vector<16x8xf32>
    %37 = vector.extract_strided_slice %34 {offsets = [0, 64], sizes = [16, 8], strides = [1, 1]} : vector<16x96xf32> to vector<16x8xf32>
    %cst_20 = arith.constant dense<0.000000e+00> : vector<16x16xf32>
    %38 = tpu.matmul %35, %36, %cst_20 {dimension_numbers = #tpu.dot_dimension_numbers<[1], [1], [0], [0], [0, 0, 1, 0], [], []>} : vector<16x8xf32>, vector<16x8xf32>, vector<16x16xf32> -> vector<16x16xf32>
    %39 = arith.addf %38, %1 : vector<16x16xf32>
    %cst_21 = arith.constant dense<0xFF800000> : vector<16xf32>
    %40 = vector.multi_reduction <maximumf>, %39, %cst_21 [1] : vector<16x16xf32> to vector<16xf32>
    %41 = vector.shape_cast %40 : vector<16xf32> to vector<16x1xf32>
    %42 = vector.broadcast %41 : vector<16x1xf32> to vector<16x16xf32>
    %43 = arith.subf %39, %42 : vector<16x16xf32>
    %44 = math.exp %43 : vector<16x16xf32>
    %cst_22 = arith.constant dense<0.000000e+00> : vector<16xf32>
    %45 = vector.multi_reduction <add>, %44, %cst_22 [1] : vector<16x16xf32> to vector<16xf32>
    %46 = vector.shape_cast %45 : vector<16xf32> to vector<16x1xf32>
    %47 = vector.broadcast %46 : vector<16x1xf32> to vector<16x16xf32>
    %48 = arith.divf %44, %47 : vector<16x16xf32>
    %cst_23 = arith.constant dense<0.000000e+00> : vector<16x8xf32>
    %49 = tpu.matmul %48, %37, %cst_23 {dimension_numbers = #tpu.dot_dimension_numbers<[1], [0], [0], [1], [0, 0, 1, 1], [], []>} : vector<16x16xf32>, vector<16x8xf32>, vector<16x8xf32> -> vector<16x8xf32>
    %c0_24 = arith.constant 0 : index
    %c0_25 = arith.constant 0 : index
    %50 = vector.load %arg19[%c0_24, %c0_25] : memref<16x32xf32, #tpu.memory_space<vmem>>, vector<16x8xf32>
    tpu.vector_store %arg19[%c0_24, %c0_25], %49 {strides = array<i32>} : memref<16x32xf32, #tpu.memory_space<vmem>>, vector<16x8xf32>,
    %51 = vector.extract_strided_slice %34 {offsets = [0, 8], sizes = [16, 8], strides = [1, 1]} : vector<16x96xf32> to vector<16x8xf32>
    %52 = vector.extract_strided_slice %34 {offsets = [0, 40], sizes = [16, 8], strides = [1, 1]} : vector<16x96xf32> to vector<16x8xf32>
    %53 = vector.extract_strided_slice %34 {offsets = [0, 72], sizes = [16, 8], strides = [1, 1]} : vector<16x96xf32> to vector<16x8xf32>
    %cst_26 = arith.constant dense<0.000000e+00> : vector<16x16xf32>
    %54 = tpu.matmul %51, %52, %cst_26 {dimension_numbers = #tpu.dot_dimension_numbers<[1], [1], [0], [0], [0, 0, 1, 0], [], []>} : vector<16x8xf32>, vector<16x8xf32>, vector<16x16xf32> -> vector<16x16xf32>
    %55 = arith.addf %54, %1 : vector<16x16xf32>
    %cst_27 = arith.constant dense<0xFF800000> : vector<16xf32>
    %56 = vector.multi_reduction <maximumf>, %55, %cst_27 [1] : vector<16x16xf32> to vector<16xf32>
    %57 = vector.shape_cast %56 : vector<16xf32> to vector<16x1xf32>
    %58 = vector.broadcast %57 : vector<16x1xf32> to vector<16x16xf32>
    %59 = arith.subf %55, %58 : vector<16x16xf32>
    %60 = math.exp %59 : vector<16x16xf32>
    %cst_28 = arith.constant dense<0.000000e+00> : vector<16xf32>
    %61 = vector.multi_reduction <add>, %60, %cst_28 [1] : vector<16x16xf32> to vector<16xf32>
    %62 = vector.shape_cast %61 : vector<16xf32> to vector<16x1xf32>
    %63 = vector.broadcast %62 : vector<16x1xf32> to vector<16x16xf32>
    %64 = arith.divf %60, %63 : vector<16x16xf32>
    %cst_29 = arith.constant dense<0.000000e+00> : vector<16x8xf32>
    %65 = tpu.matmul %64, %53, %cst_29 {dimension_numbers = #tpu.dot_dimension_numbers<[1], [0], [0], [1], [0, 0, 1, 1], [], []>} : vector<16x16xf32>, vector<16x8xf32>, vector<16x8xf32> -> vector<16x8xf32>
    %c0_30 = arith.constant 0 : index
    %c8 = arith.constant 8 : index
    %66 = vector.load %arg19[%c0_30, %c8] : memref<16x32xf32, #tpu.memory_space<vmem>>, vector<16x8xf32>
    tpu.vector_store %arg19[%c0_30, %c8], %65 {strides = array<i32>} : memref<16x32xf32, #tpu.memory_space<vmem>>, vector<16x8xf32>,
    %67 = vector.extract_strided_slice %34 {offsets = [0, 16], sizes = [16, 8], strides = [1, 1]} : vector<16x96xf32> to vector<16x8xf32>
    %68 = vector.extract_strided_slice %34 {offsets = [0, 48], sizes = [16, 8], strides = [1, 1]} : vector<16x96xf32> to vector<16x8xf32>
    %69 = vector.extract_strided_slice %34 {offsets = [0, 80], sizes = [16, 8], strides = [1, 1]} : vector<16x96xf32> to vector<16x8xf32>
    %cst_31 = arith.constant dense<0.000000e+00> : vector<16x16xf32>
    %70 = tpu.matmul %67, %68, %cst_31 {dimension_numbers = #tpu.dot_dimension_numbers<[1], [1], [0], [0], [0, 0, 1, 0], [], []>} : vector<16x8xf32>, vector<16x8xf32>, vector<16x16xf32> -> vector<16x16xf32>
    %71 = arith.addf %70, %1 : vector<16x16xf32>
    %cst_32 = arith.constant dense<0xFF800000> : vector<16xf32>
    %72 = vector.multi_reduction <maximumf>, %71, %cst_32 [1] : vector<16x16xf32> to vector<16xf32>
    %73 = vector.shape_cast %72 : vector<16xf32> to vector<16x1xf32>
    %74 = vector.broadcast %73 : vector<16x1xf32> to vector<16x16xf32>
    %75 = arith.subf %71, %74 : vector<16x16xf32>
    %76 = math.exp %75 : vector<16x16xf32>
    %cst_33 = arith.constant dense<0.000000e+00> : vector<16xf32>
    %77 = vector.multi_reduction <add>, %76, %cst_33 [1] : vector<16x16xf32> to vector<16xf32>
    %78 = vector.shape_cast %77 : vector<16xf32> to vector<16x1xf32>
    %79 = vector.broadcast %78 : vector<16x1xf32> to vector<16x16xf32>
    %80 = arith.divf %76, %79 : vector<16x16xf32>
    %cst_34 = arith.constant dense<0.000000e+00> : vector<16x8xf32>
    %81 = tpu.matmul %80, %69, %cst_34 {dimension_numbers = #tpu.dot_dimension_numbers<[1], [0], [0], [1], [0, 0, 1, 1], [], []>} : vector<16x16xf32>, vector<16x8xf32>, vector<16x8xf32> -> vector<16x8xf32>
    %c0_35 = arith.constant 0 : index
    %c16 = arith.constant 16 : index
    %82 = vector.load %arg19[%c0_35, %c16] : memref<16x32xf32, #tpu.memory_space<vmem>>, vector<16x8xf32>
    tpu.vector_store %arg19[%c0_35, %c16], %81 {strides = array<i32>} : memref<16x32xf32, #tpu.memory_space<vmem>>, vector<16x8xf32>,
    %83 = vector.extract_strided_slice %34 {offsets = [0, 24], sizes = [16, 8], strides = [1, 1]} : vector<16x96xf32> to vector<16x8xf32>
    %84 = vector.extract_strided_slice %34 {offsets = [0, 56], sizes = [16, 8], strides = [1, 1]} : vector<16x96xf32> to vector<16x8xf32>
    %85 = vector.extract_strided_slice %34 {offsets = [0, 88], sizes = [16, 8], strides = [1, 1]} : vector<16x96xf32> to vector<16x8xf32>
    %cst_36 = arith.constant dense<0.000000e+00> : vector<16x16xf32>
    %86 = tpu.matmul %83, %84, %cst_36 {dimension_numbers = #tpu.dot_dimension_numbers<[1], [1], [0], [0], [0, 0, 1, 0], [], []>} : vector<16x8xf32>, vector<16x8xf32>, vector<16x16xf32> -> vector<16x16xf32>
    %87 = arith.addf %86, %1 : vector<16x16xf32>
    %cst_37 = arith.constant dense<0xFF800000> : vector<16xf32>
    %88 = vector.multi_reduction <maximumf>, %87, %cst_37 [1] : vector<16x16xf32> to vector<16xf32>
    %89 = vector.shape_cast %88 : vector<16xf32> to vector<16x1xf32>
    %90 = vector.broadcast %89 : vector<16x1xf32> to vector<16x16xf32>
    %91 = arith.subf %87, %90 : vector<16x16xf32>
    %92 = math.exp %91 : vector<16x16xf32>
    %cst_38 = arith.constant dense<0.000000e+00> : vector<16xf32>
    %93 = vector.multi_reduction <add>, %92, %cst_38 [1] : vector<16x16xf32> to vector<16xf32>
    %94 = vector.shape_cast %93 : vector<16xf32> to vector<16x1xf32>
    %95 = vector.broadcast %94 : vector<16x1xf32> to vector<16x16xf32>
    %96 = arith.divf %92, %95 : vector<16x16xf32>
    %cst_39 = arith.constant dense<0.000000e+00> : vector<16x8xf32>
    %97 = tpu.matmul %96, %85, %cst_39 {dimension_numbers = #tpu.dot_dimension_numbers<[1], [0], [0], [1], [0, 0, 1, 1], [], []>} : vector<16x16xf32>, vector<16x8xf32>, vector<16x8xf32> -> vector<16x8xf32>
    %c0_40 = arith.constant 0 : index
    %c24 = arith.constant 24 : index
    %98 = vector.load %arg19[%c0_40, %c24] : memref<16x32xf32, #tpu.memory_space<vmem>>, vector<16x8xf32>
    tpu.vector_store %arg19[%c0_40, %c24], %97 {strides = array<i32>} : memref<16x32xf32, #tpu.memory_space<vmem>>, vector<16x8xf32>,
    %c0_41 = arith.constant 0 : index
    %c0_42 = arith.constant 0 : index
    %99 = vector.load %arg19[%c0_41, %c0_42] : memref<16x32xf32, #tpu.memory_space<vmem>>, vector<16x32xf32>
    %c0_43 = arith.constant 0 : index
    %c0_44 = arith.constant 0 : index
    %c0_45 = arith.constant 0 : index
    %100 = vector.load %arg8[%c0_43, %c0_44, %c0_45] : memref<2x32x32xf32, #tpu.memory_space<vmem>>, vector<1x32x32xf32>
    %101 = vector.shape_cast %100 : vector<1x32x32xf32> to vector<32x32xf32>
    %cst_46 = arith.constant dense<0.000000e+00> : vector<16x32xf32>
    %102 = tpu.matmul %99, %101, %cst_46 {dimension_numbers = #tpu.dot_dimension_numbers<[1], [0], [0], [1], [0, 0, 1, 1], [], []>} : vector<16x32xf32>, vector<32x32xf32>, vector<16x32xf32> -> vector<16x32xf32>
    %c0_47 = arith.constant 0 : index
    %c0_48 = arith.constant 0 : index
    %c0_49 = arith.constant 0 : index
    %103 = vector.load %arg9[%c0_47, %c0_48, %c0_49] : memref<2x1x32xf32, #tpu.memory_space<vmem>>, vector<1x1x32xf32>
    %104 = vector.shape_cast %103 : vector<1x1x32xf32> to vector<1x32xf32>
    %105 = vector.broadcast %104 : vector<1x32xf32> to vector<16x32xf32>
    %106 = arith.addf %102, %105 : vector<16x32xf32>
    %107 = arith.addf %0, %106 : vector<16x32xf32>
    %c0_50 = arith.constant 0 : index
    %c0_51 = arith.constant 0 : index
    %c0_52 = arith.constant 0 : index
    %108 = vector.load %arg4[%c0_50, %c0_51, %c0_52] : memref<2x1x32xf32, #tpu.memory_space<vmem>>, vector<1x1x32xf32>
    %109 = vector.shape_cast %108 : vector<1x1x32xf32> to vector<1x32xf32>
    %c0_53 = arith.constant 0 : index
    %c0_54 = arith.constant 0 : index
    %c0_55 = arith.constant 0 : index
    %110 = vector.load %arg5[%c0_53, %c0_54, %c0_55] : memref<2x1x32xf32, #tpu.memory_space<vmem>>, vector<1x1x32xf32>
    %111 = vector.shape_cast %110 : vector<1x1x32xf32> to vector<1x32xf32>
    %cst_56 = arith.constant dense<0.000000e+00> : vector<16xf32>
    %112 = vector.multi_reduction <add>, %107, %cst_56 [1] : vector<16x32xf32> to vector<16xf32>
    %113 = vector.shape_cast %112 : vector<16xf32> to vector<16x1xf32>
    %cst_57 = arith.constant 3.200000e+01 : f32
    %114 = vector.broadcast %cst_57 : f32 to vector<16x1xf32>
    %115 = arith.divf %113, %114 : vector<16x1xf32>
    %116 = vector.broadcast %115 : vector<16x1xf32> to vector<16x32xf32>
    %117 = arith.subf %107, %116 : vector<16x32xf32>
    %118 = arith.mulf %117, %117 : vector<16x32xf32>
    %cst_58 = arith.constant dense<0.000000e+00> : vector<16xf32>
    %119 = vector.multi_reduction <add>, %118, %cst_58 [1] : vector<16x32xf32> to vector<16xf32>
    %120 = vector.shape_cast %119 : vector<16xf32> to vector<16x1xf32>
    %cst_59 = arith.constant 3.200000e+01 : f32
    %121 = vector.broadcast %cst_59 : f32 to vector<16x1xf32>
    %122 = arith.divf %120, %121 : vector<16x1xf32>
    %123 = vector.broadcast %115 : vector<16x1xf32> to vector<16x32xf32>
    %124 = arith.subf %107, %123 : vector<16x32xf32>
    %cst_60 = arith.constant 9.99999997E-7 : f32
    %125 = vector.broadcast %cst_60 : f32 to vector<16x1xf32>
    %126 = arith.addf %122, %125 : vector<16x1xf32>
    %127 = math.rsqrt %126 : vector<16x1xf32>
    %128 = vector.broadcast %127 : vector<16x1xf32> to vector<16x32xf32>
    %129 = arith.mulf %124, %128 : vector<16x32xf32>
    %130 = vector.broadcast %109 : vector<1x32xf32> to vector<16x32xf32>
    %131 = arith.mulf %129, %130 : vector<16x32xf32>
    %132 = vector.broadcast %111 : vector<1x32xf32> to vector<16x32xf32>
    %133 = arith.addf %131, %132 : vector<16x32xf32>
    %c0_61 = arith.constant 0 : index
    %c0_62 = arith.constant 0 : index
    %c0_63 = arith.constant 0 : index
    %134 = vector.load %arg10[%c0_61, %c0_62, %c0_63] : memref<2x32x128xf32, #tpu.memory_space<vmem>>, vector<1x32x128xf32>
    %135 = vector.shape_cast %134 : vector<1x32x128xf32> to vector<32x128xf32>
    %cst_64 = arith.constant dense<0.000000e+00> : vector<16x128xf32>
    %136 = tpu.matmul %133, %135, %cst_64 {dimension_numbers = #tpu.dot_dimension_numbers<[1], [0], [0], [1], [0, 0, 1, 1], [], []>} : vector<16x32xf32>, vector<32x128xf32>, vector<16x128xf32> -> vector<16x128xf32>
    %c0_65 = arith.constant 0 : index
    %c0_66 = arith.constant 0 : index
    %c0_67 = arith.constant 0 : index
    %137 = vector.load %arg11[%c0_65, %c0_66, %c0_67] : memref<2x1x128xf32, #tpu.memory_space<vmem>>, vector<1x1x128xf32>
    %138 = vector.shape_cast %137 : vector<1x1x128xf32> to vector<1x128xf32>
    %139 = vector.broadcast %138 : vector<1x128xf32> to vector<16x128xf32>
    %140 = arith.addf %136, %139 : vector<16x128xf32>
    %141 = math.absf %140 : vector<16x128xf32>
    %cst_68 = arith.constant 0.707106769 : f32
    %142 = vector.broadcast %cst_68 : f32 to vector<16x128xf32>
    %143 = arith.mulf %141, %142 : vector<16x128xf32>
    %cst_69 = arith.constant 0.327591091 : f32
    %144 = vector.broadcast %cst_69 : f32 to vector<16x128xf32>
    %145 = arith.mulf %144, %143 : vector<16x128xf32>
    %cst_70 = arith.constant 1.000000e+00 : f32
    %146 = vector.broadcast %cst_70 : f32 to vector<16x128xf32>
    %147 = arith.addf %146, %145 : vector<16x128xf32>
    %cst_71 = arith.constant 1.000000e+00 : f32
    %148 = vector.broadcast %cst_71 : f32 to vector<16x128xf32>
    %149 = arith.divf %148, %147 : vector<16x128xf32>
    %cst_72 = arith.constant 1.06140542 : f32
    %150 = vector.broadcast %cst_72 : f32 to vector<16x128xf32>
    %151 = arith.mulf %149, %150 : vector<16x128xf32>
    %cst_73 = arith.constant -1.45315206 : f32
    %152 = vector.broadcast %cst_73 : f32 to vector<16x128xf32>
    %153 = arith.addf %152, %151 : vector<16x128xf32>
    %154 = arith.mulf %149, %153 : vector<16x128xf32>
    %cst_74 = arith.constant 1.42141378 : f32
    %155 = vector.broadcast %cst_74 : f32 to vector<16x128xf32>
    %156 = arith.addf %155, %154 : vector<16x128xf32>
    %157 = arith.mulf %149, %156 : vector<16x128xf32>
    %cst_75 = arith.constant -0.284496725 : f32
    %158 = vector.broadcast %cst_75 : f32 to vector<16x128xf32>
    %159 = arith.addf %158, %157 : vector<16x128xf32>
    %160 = arith.mulf %149, %159 : vector<16x128xf32>
    %cst_76 = arith.constant 0.254829586 : f32
    %161 = vector.broadcast %cst_76 : f32 to vector<16x128xf32>
    %162 = arith.addf %161, %160 : vector<16x128xf32>
    %163 = arith.mulf %149, %162 : vector<16x128xf32>
    %cst_77 = arith.constant 0.000000e+00 : f32
    %164 = vector.broadcast %cst_77 : f32 to vector<16x128xf32>
    %165 = arith.subf %164, %143 : vector<16x128xf32>
    %166 = arith.mulf %165, %143 : vector<16x128xf32>
    %167 = math.exp %166 : vector<16x128xf32>
    %168 = arith.mulf %163, %167 : vector<16x128xf32>
    %cst_78 = arith.constant 1.000000e+00 : f32
    %169 = vector.broadcast %cst_78 : f32 to vector<16x128xf32>
    %170 = arith.subf %169, %168 : vector<16x128xf32>
    %cst_79 = arith.constant 0.000000e+00 : f32
    %171 = vector.broadcast %cst_79 : f32 to vector<16x128xf32>
    %172 = arith.cmpf oge, %140, %171 : vector<16x128xf32>
    %cst_80 = arith.constant 0.000000e+00 : f32
    %173 = vector.broadcast %cst_80 : f32 to vector<16x128xf32>
    %174 = arith.subf %173, %170 : vector<16x128xf32>
    %175 = arith.select %172, %170, %174 : vector<16x128xi1>, vector<16x128xf32>
    %cst_81 = arith.constant 5.000000e-01 : f32
    %176 = vector.broadcast %cst_81 : f32 to vector<16x128xf32>
    %177 = arith.mulf %176, %140 : vector<16x128xf32>
    %cst_82 = arith.constant 1.000000e+00 : f32
    %178 = vector.broadcast %cst_82 : f32 to vector<16x128xf32>
    %179 = arith.addf %178, %175 : vector<16x128xf32>
    %180 = arith.mulf %177, %179 : vector<16x128xf32>
    %c0_83 = arith.constant 0 : index
    %c0_84 = arith.constant 0 : index
    %c0_85 = arith.constant 0 : index
    %181 = vector.load %arg12[%c0_83, %c0_84, %c0_85] : memref<2x128x32xf32, #tpu.memory_space<vmem>>, vector<1x128x32xf32>
    %182 = vector.shape_cast %181 : vector<1x128x32xf32> to vector<128x32xf32>
    %cst_86 = arith.constant dense<0.000000e+00> : vector<16x32xf32>
    %183 = tpu.matmul %180, %182, %cst_86 {dimension_numbers = #tpu.dot_dimension_numbers<[1], [0], [0], [1], [0, 0, 1, 1], [], []>} : vector<16x128xf32>, vector<128x32xf32>, vector<16x32xf32> -> vector<16x32xf32>
    %184 = arith.addf %107, %183 : vector<16x32xf32>
    %c0_87 = arith.constant 0 : index
    %c0_88 = arith.constant 0 : index
    %c0_89 = arith.constant 0 : index
    %185 = vector.load %arg13[%c0_87, %c0_88, %c0_89] : memref<2x1x32xf32, #tpu.memory_space<vmem>>, vector<1x1x32xf32>
    %186 = vector.shape_cast %185 : vector<1x1x32xf32> to vector<1x32xf32>
    %187 = vector.broadcast %186 : vector<1x32xf32> to vector<16x32xf32>
    %188 = arith.addf %184, %187 : vector<16x32xf32>
    %c1 = arith.constant 1 : index
    %c0_90 = arith.constant 0 : index
    %c0_91 = arith.constant 0 : index
    %189 = vector.load %arg2[%c1, %c0_90, %c0_91] : memref<2x1x32xf32, #tpu.memory_space<vmem>>, vector<1x1x32xf32>
    %190 = vector.shape_cast %189 : vector<1x1x32xf32> to vector<1x32xf32>
    %c1_92 = arith.constant 1 : index
    %c0_93 = arith.constant 0 : index
    %c0_94 = arith.constant 0 : index
    %191 = vector.load %arg3[%c1_92, %c0_93, %c0_94] : memref<2x1x32xf32, #tpu.memory_space<vmem>>, vector<1x1x32xf32>
    %192 = vector.shape_cast %191 : vector<1x1x32xf32> to vector<1x32xf32>
    %cst_95 = arith.constant dense<0.000000e+00> : vector<16xf32>
    %193 = vector.multi_reduction <add>, %188, %cst_95 [1] : vector<16x32xf32> to vector<16xf32>
    %194 = vector.shape_cast %193 : vector<16xf32> to vector<16x1xf32>
    %cst_96 = arith.constant 3.200000e+01 : f32
    %195 = vector.broadcast %cst_96 : f32 to vector<16x1xf32>
    %196 = arith.divf %194, %195 : vector<16x1xf32>
    %197 = vector.broadcast %196 : vector<16x1xf32> to vector<16x32xf32>
    %198 = arith.subf %188, %197 : vector<16x32xf32>
    %199 = arith.mulf %198, %198 : vector<16x32xf32>
    %cst_97 = arith.constant dense<0.000000e+00> : vector<16xf32>
    %200 = vector.multi_reduction <add>, %199, %cst_97 [1] : vector<16x32xf32> to vector<16xf32>
    %201 = vector.shape_cast %200 : vector<16xf32> to vector<16x1xf32>
    %cst_98 = arith.constant 3.200000e+01 : f32
    %202 = vector.broadcast %cst_98 : f32 to vector<16x1xf32>
    %203 = arith.divf %201, %202 : vector<16x1xf32>
    %204 = vector.broadcast %196 : vector<16x1xf32> to vector<16x32xf32>
    %205 = arith.subf %188, %204 : vector<16x32xf32>
    %cst_99 = arith.constant 9.99999997E-7 : f32
    %206 = vector.broadcast %cst_99 : f32 to vector<16x1xf32>
    %207 = arith.addf %203, %206 : vector<16x1xf32>
    %208 = math.rsqrt %207 : vector<16x1xf32>
    %209 = vector.broadcast %208 : vector<16x1xf32> to vector<16x32xf32>
    %210 = arith.mulf %205, %209 : vector<16x32xf32>
    %211 = vector.broadcast %190 : vector<1x32xf32> to vector<16x32xf32>
    %212 = arith.mulf %210, %211 : vector<16x32xf32>
    %213 = vector.broadcast %192 : vector<1x32xf32> to vector<16x32xf32>
    %214 = arith.addf %212, %213 : vector<16x32xf32>
    %c1_100 = arith.constant 1 : index
    %c0_101 = arith.constant 0 : index
    %c0_102 = arith.constant 0 : index
    %215 = vector.load %arg6[%c1_100, %c0_101, %c0_102] : memref<2x32x96xf32, #tpu.memory_space<vmem>>, vector<1x32x96xf32>
    %216 = vector.shape_cast %215 : vector<1x32x96xf32> to vector<32x96xf32>
    %cst_103 = arith.constant dense<0.000000e+00> : vector<16x96xf32>
    %217 = tpu.matmul %214, %216, %cst_103 {dimension_numbers = #tpu.dot_dimension_numbers<[1], [0], [0], [1], [0, 0, 1, 1], [], []>} : vector<16x32xf32>, vector<32x96xf32>, vector<16x96xf32> -> vector<16x96xf32>
    %c1_104 = arith.constant 1 : index
    %c0_105 = arith.constant 0 : index
    %c0_106 = arith.constant 0 : index
    %218 = vector.load %arg7[%c1_104, %c0_105, %c0_106] : memref<2x1x96xf32, #tpu.memory_space<vmem>>, vector<1x1x96xf32>
    %219 = vector.shape_cast %218 : vector<1x1x96xf32> to vector<1x96xf32>
    %220 = vector.broadcast %219 : vector<1x96xf32> to vector<16x96xf32>
    %221 = arith.addf %217, %220 : vector<16x96xf32>
    %222 = vector.extract_strided_slice %221 {offsets = [0, 0], sizes = [16, 8], strides = [1, 1]} : vector<16x96xf32> to vector<16x8xf32>
    %223 = vector.extract_strided_slice %221 {offsets = [0, 32], sizes = [16, 8], strides = [1, 1]} : vector<16x96xf32> to vector<16x8xf32>
    %224 = vector.extract_strided_slice %221 {offsets = [0, 64], sizes = [16, 8], strides = [1, 1]} : vector<16x96xf32> to vector<16x8xf32>
    %cst_107 = arith.constant dense<0.000000e+00> : vector<16x16xf32>
    %225 = tpu.matmul %222, %223, %cst_107 {dimension_numbers = #tpu.dot_dimension_numbers<[1], [1], [0], [0], [0, 0, 1, 0], [], []>} : vector<16x8xf32>, vector<16x8xf32>, vector<16x16xf32> -> vector<16x16xf32>
    %226 = arith.addf %225, %1 : vector<16x16xf32>
    %cst_108 = arith.constant dense<0xFF800000> : vector<16xf32>
    %227 = vector.multi_reduction <maximumf>, %226, %cst_108 [1] : vector<16x16xf32> to vector<16xf32>
    %228 = vector.shape_cast %227 : vector<16xf32> to vector<16x1xf32>
    %229 = vector.broadcast %228 : vector<16x1xf32> to vector<16x16xf32>
    %230 = arith.subf %226, %229 : vector<16x16xf32>
    %231 = math.exp %230 : vector<16x16xf32>
    %cst_109 = arith.constant dense<0.000000e+00> : vector<16xf32>
    %232 = vector.multi_reduction <add>, %231, %cst_109 [1] : vector<16x16xf32> to vector<16xf32>
    %233 = vector.shape_cast %232 : vector<16xf32> to vector<16x1xf32>
    %234 = vector.broadcast %233 : vector<16x1xf32> to vector<16x16xf32>
    %235 = arith.divf %231, %234 : vector<16x16xf32>
    %cst_110 = arith.constant dense<0.000000e+00> : vector<16x8xf32>
    %236 = tpu.matmul %235, %224, %cst_110 {dimension_numbers = #tpu.dot_dimension_numbers<[1], [0], [0], [1], [0, 0, 1, 1], [], []>} : vector<16x16xf32>, vector<16x8xf32>, vector<16x8xf32> -> vector<16x8xf32>
    %c0_111 = arith.constant 0 : index
    %c0_112 = arith.constant 0 : index
    %237 = vector.load %arg19[%c0_111, %c0_112] : memref<16x32xf32, #tpu.memory_space<vmem>>, vector<16x8xf32>
    tpu.vector_store %arg19[%c0_111, %c0_112], %236 {strides = array<i32>} : memref<16x32xf32, #tpu.memory_space<vmem>>, vector<16x8xf32>,
    %238 = vector.extract_strided_slice %221 {offsets = [0, 8], sizes = [16, 8], strides = [1, 1]} : vector<16x96xf32> to vector<16x8xf32>
    %239 = vector.extract_strided_slice %221 {offsets = [0, 40], sizes = [16, 8], strides = [1, 1]} : vector<16x96xf32> to vector<16x8xf32>
    %240 = vector.extract_strided_slice %221 {offsets = [0, 72], sizes = [16, 8], strides = [1, 1]} : vector<16x96xf32> to vector<16x8xf32>
    %cst_113 = arith.constant dense<0.000000e+00> : vector<16x16xf32>
    %241 = tpu.matmul %238, %239, %cst_113 {dimension_numbers = #tpu.dot_dimension_numbers<[1], [1], [0], [0], [0, 0, 1, 0], [], []>} : vector<16x8xf32>, vector<16x8xf32>, vector<16x16xf32> -> vector<16x16xf32>
    %242 = arith.addf %241, %1 : vector<16x16xf32>
    %cst_114 = arith.constant dense<0xFF800000> : vector<16xf32>
    %243 = vector.multi_reduction <maximumf>, %242, %cst_114 [1] : vector<16x16xf32> to vector<16xf32>
    %244 = vector.shape_cast %243 : vector<16xf32> to vector<16x1xf32>
    %245 = vector.broadcast %244 : vector<16x1xf32> to vector<16x16xf32>
    %246 = arith.subf %242, %245 : vector<16x16xf32>
    %247 = math.exp %246 : vector<16x16xf32>
    %cst_115 = arith.constant dense<0.000000e+00> : vector<16xf32>
    %248 = vector.multi_reduction <add>, %247, %cst_115 [1] : vector<16x16xf32> to vector<16xf32>
    %249 = vector.shape_cast %248 : vector<16xf32> to vector<16x1xf32>
    %250 = vector.broadcast %249 : vector<16x1xf32> to vector<16x16xf32>
    %251 = arith.divf %247, %250 : vector<16x16xf32>
    %cst_116 = arith.constant dense<0.000000e+00> : vector<16x8xf32>
    %252 = tpu.matmul %251, %240, %cst_116 {dimension_numbers = #tpu.dot_dimension_numbers<[1], [0], [0], [1], [0, 0, 1, 1], [], []>} : vector<16x16xf32>, vector<16x8xf32>, vector<16x8xf32> -> vector<16x8xf32>
    %c0_117 = arith.constant 0 : index
    %c8_118 = arith.constant 8 : index
    %253 = vector.load %arg19[%c0_117, %c8_118] : memref<16x32xf32, #tpu.memory_space<vmem>>, vector<16x8xf32>
    tpu.vector_store %arg19[%c0_117, %c8_118], %252 {strides = array<i32>} : memref<16x32xf32, #tpu.memory_space<vmem>>, vector<16x8xf32>,
    %254 = vector.extract_strided_slice %221 {offsets = [0, 16], sizes = [16, 8], strides = [1, 1]} : vector<16x96xf32> to vector<16x8xf32>
    %255 = vector.extract_strided_slice %221 {offsets = [0, 48], sizes = [16, 8], strides = [1, 1]} : vector<16x96xf32> to vector<16x8xf32>
    %256 = vector.extract_strided_slice %221 {offsets = [0, 80], sizes = [16, 8], strides = [1, 1]} : vector<16x96xf32> to vector<16x8xf32>
    %cst_119 = arith.constant dense<0.000000e+00> : vector<16x16xf32>
    %257 = tpu.matmul %254, %255, %cst_119 {dimension_numbers = #tpu.dot_dimension_numbers<[1], [1], [0], [0], [0, 0, 1, 0], [], []>} : vector<16x8xf32>, vector<16x8xf32>, vector<16x16xf32> -> vector<16x16xf32>
    %258 = arith.addf %257, %1 : vector<16x16xf32>
    %cst_120 = arith.constant dense<0xFF800000> : vector<16xf32>
    %259 = vector.multi_reduction <maximumf>, %258, %cst_120 [1] : vector<16x16xf32> to vector<16xf32>
    %260 = vector.shape_cast %259 : vector<16xf32> to vector<16x1xf32>
    %261 = vector.broadcast %260 : vector<16x1xf32> to vector<16x16xf32>
    %262 = arith.subf %258, %261 : vector<16x16xf32>
    %263 = math.exp %262 : vector<16x16xf32>
    %cst_121 = arith.constant dense<0.000000e+00> : vector<16xf32>
    %264 = vector.multi_reduction <add>, %263, %cst_121 [1] : vector<16x16xf32> to vector<16xf32>
    %265 = vector.shape_cast %264 : vector<16xf32> to vector<16x1xf32>
    %266 = vector.broadcast %265 : vector<16x1xf32> to vector<16x16xf32>
    %267 = arith.divf %263, %266 : vector<16x16xf32>
    %cst_122 = arith.constant dense<0.000000e+00> : vector<16x8xf32>
    %268 = tpu.matmul %267, %256, %cst_122 {dimension_numbers = #tpu.dot_dimension_numbers<[1], [0], [0], [1], [0, 0, 1, 1], [], []>} : vector<16x16xf32>, vector<16x8xf32>, vector<16x8xf32> -> vector<16x8xf32>
    %c0_123 = arith.constant 0 : index
    %c16_124 = arith.constant 16 : index
    %269 = vector.load %arg19[%c0_123, %c16_124] : memref<16x32xf32, #tpu.memory_space<vmem>>, vector<16x8xf32>
    tpu.vector_store %arg19[%c0_123, %c16_124], %268 {strides = array<i32>} : memref<16x32xf32, #tpu.memory_space<vmem>>, vector<16x8xf32>,
    %270 = vector.extract_strided_slice %221 {offsets = [0, 24], sizes = [16, 8], strides = [1, 1]} : vector<16x96xf32> to vector<16x8xf32>
    %271 = vector.extract_strided_slice %221 {offsets = [0, 56], sizes = [16, 8], strides = [1, 1]} : vector<16x96xf32> to vector<16x8xf32>
    %272 = vector.extract_strided_slice %221 {offsets = [0, 88], sizes = [16, 8], strides = [1, 1]} : vector<16x96xf32> to vector<16x8xf32>
    %cst_125 = arith.constant dense<0.000000e+00> : vector<16x16xf32>
    %273 = tpu.matmul %270, %271, %cst_125 {dimension_numbers = #tpu.dot_dimension_numbers<[1], [1], [0], [0], [0, 0, 1, 0], [], []>} : vector<16x8xf32>, vector<16x8xf32>, vector<16x16xf32> -> vector<16x16xf32>
    %274 = arith.addf %273, %1 : vector<16x16xf32>
    %cst_126 = arith.constant dense<0xFF800000> : vector<16xf32>
    %275 = vector.multi_reduction <maximumf>, %274, %cst_126 [1] : vector<16x16xf32> to vector<16xf32>
    %276 = vector.shape_cast %275 : vector<16xf32> to vector<16x1xf32>
    %277 = vector.broadcast %276 : vector<16x1xf32> to vector<16x16xf32>
    %278 = arith.subf %274, %277 : vector<16x16xf32>
    %279 = math.exp %278 : vector<16x16xf32>
    %cst_127 = arith.constant dense<0.000000e+00> : vector<16xf32>
    %280 = vector.multi_reduction <add>, %279, %cst_127 [1] : vector<16x16xf32> to vector<16xf32>
    %281 = vector.shape_cast %280 : vector<16xf32> to vector<16x1xf32>
    %282 = vector.broadcast %281 : vector<16x1xf32> to vector<16x16xf32>
    %283 = arith.divf %279, %282 : vector<16x16xf32>
    %cst_128 = arith.constant dense<0.000000e+00> : vector<16x8xf32>
    %284 = tpu.matmul %283, %272, %cst_128 {dimension_numbers = #tpu.dot_dimension_numbers<[1], [0], [0], [1], [0, 0, 1, 1], [], []>} : vector<16x16xf32>, vector<16x8xf32>, vector<16x8xf32> -> vector<16x8xf32>
    %c0_129 = arith.constant 0 : index
    %c24_130 = arith.constant 24 : index
    %285 = vector.load %arg19[%c0_129, %c24_130] : memref<16x32xf32, #tpu.memory_space<vmem>>, vector<16x8xf32>
    tpu.vector_store %arg19[%c0_129, %c24_130], %284 {strides = array<i32>} : memref<16x32xf32, #tpu.memory_space<vmem>>, vector<16x8xf32>,
    %c0_131 = arith.constant 0 : index
    %c0_132 = arith.constant 0 : index
    %286 = vector.load %arg19[%c0_131, %c0_132] : memref<16x32xf32, #tpu.memory_space<vmem>>, vector<16x32xf32>
    %c1_133 = arith.constant 1 : index
    %c0_134 = arith.constant 0 : index
    %c0_135 = arith.constant 0 : index
    %287 = vector.load %arg8[%c1_133, %c0_134, %c0_135] : memref<2x32x32xf32, #tpu.memory_space<vmem>>, vector<1x32x32xf32>
    %288 = vector.shape_cast %287 : vector<1x32x32xf32> to vector<32x32xf32>
    %cst_136 = arith.constant dense<0.000000e+00> : vector<16x32xf32>
    %289 = tpu.matmul %286, %288, %cst_136 {dimension_numbers = #tpu.dot_dimension_numbers<[1], [0], [0], [1], [0, 0, 1, 1], [], []>} : vector<16x32xf32>, vector<32x32xf32>, vector<16x32xf32> -> vector<16x32xf32>
    %c1_137 = arith.constant 1 : index
    %c0_138 = arith.constant 0 : index
    %c0_139 = arith.constant 0 : index
    %290 = vector.load %arg9[%c1_137, %c0_138, %c0_139] : memref<2x1x32xf32, #tpu.memory_space<vmem>>, vector<1x1x32xf32>
    %291 = vector.shape_cast %290 : vector<1x1x32xf32> to vector<1x32xf32>
    %292 = vector.broadcast %291 : vector<1x32xf32> to vector<16x32xf32>
    %293 = arith.addf %289, %292 : vector<16x32xf32>
    %294 = arith.addf %188, %293 : vector<16x32xf32>
    %c1_140 = arith.constant 1 : index
    %c0_141 = arith.constant 0 : index
    %c0_142 = arith.constant 0 : index
    %295 = vector.load %arg4[%c1_140, %c0_141, %c0_142] : memref<2x1x32xf32, #tpu.memory_space<vmem>>, vector<1x1x32xf32>
    %296 = vector.shape_cast %295 : vector<1x1x32xf32> to vector<1x32xf32>
    %c1_143 = arith.constant 1 : index
    %c0_144 = arith.constant 0 : index
    %c0_145 = arith.constant 0 : index
    %297 = vector.load %arg5[%c1_143, %c0_144, %c0_145] : memref<2x1x32xf32, #tpu.memory_space<vmem>>, vector<1x1x32xf32>
    %298 = vector.shape_cast %297 : vector<1x1x32xf32> to vector<1x32xf32>
    %cst_146 = arith.constant dense<0.000000e+00> : vector<16xf32>
    %299 = vector.multi_reduction <add>, %294, %cst_146 [1] : vector<16x32xf32> to vector<16xf32>
    %300 = vector.shape_cast %299 : vector<16xf32> to vector<16x1xf32>
    %cst_147 = arith.constant 3.200000e+01 : f32
    %301 = vector.broadcast %cst_147 : f32 to vector<16x1xf32>
    %302 = arith.divf %300, %301 : vector<16x1xf32>
    %303 = vector.broadcast %302 : vector<16x1xf32> to vector<16x32xf32>
    %304 = arith.subf %294, %303 : vector<16x32xf32>
    %305 = arith.mulf %304, %304 : vector<16x32xf32>
    %cst_148 = arith.constant dense<0.000000e+00> : vector<16xf32>
    %306 = vector.multi_reduction <add>, %305, %cst_148 [1] : vector<16x32xf32> to vector<16xf32>
    %307 = vector.shape_cast %306 : vector<16xf32> to vector<16x1xf32>
    %cst_149 = arith.constant 3.200000e+01 : f32
    %308 = vector.broadcast %cst_149 : f32 to vector<16x1xf32>
    %309 = arith.divf %307, %308 : vector<16x1xf32>
    %310 = vector.broadcast %302 : vector<16x1xf32> to vector<16x32xf32>
    %311 = arith.subf %294, %310 : vector<16x32xf32>
    %cst_150 = arith.constant 9.99999997E-7 : f32
    %312 = vector.broadcast %cst_150 : f32 to vector<16x1xf32>
    %313 = arith.addf %309, %312 : vector<16x1xf32>
    %314 = math.rsqrt %313 : vector<16x1xf32>
    %315 = vector.broadcast %314 : vector<16x1xf32> to vector<16x32xf32>
    %316 = arith.mulf %311, %315 : vector<16x32xf32>
    %317 = vector.broadcast %296 : vector<1x32xf32> to vector<16x32xf32>
    %318 = arith.mulf %316, %317 : vector<16x32xf32>
    %319 = vector.broadcast %298 : vector<1x32xf32> to vector<16x32xf32>
    %320 = arith.addf %318, %319 : vector<16x32xf32>
    %c1_151 = arith.constant 1 : index
    %c0_152 = arith.constant 0 : index
    %c0_153 = arith.constant 0 : index
    %321 = vector.load %arg10[%c1_151, %c0_152, %c0_153] : memref<2x32x128xf32, #tpu.memory_space<vmem>>, vector<1x32x128xf32>
    %322 = vector.shape_cast %321 : vector<1x32x128xf32> to vector<32x128xf32>
    %cst_154 = arith.constant dense<0.000000e+00> : vector<16x128xf32>
    %323 = tpu.matmul %320, %322, %cst_154 {dimension_numbers = #tpu.dot_dimension_numbers<[1], [0], [0], [1], [0, 0, 1, 1], [], []>} : vector<16x32xf32>, vector<32x128xf32>, vector<16x128xf32> -> vector<16x128xf32>
    %c1_155 = arith.constant 1 : index
    %c0_156 = arith.constant 0 : index
    %c0_157 = arith.constant 0 : index
    %324 = vector.load %arg11[%c1_155, %c0_156, %c0_157] : memref<2x1x128xf32, #tpu.memory_space<vmem>>, vector<1x1x128xf32>
    %325 = vector.shape_cast %324 : vector<1x1x128xf32> to vector<1x128xf32>
    %326 = vector.broadcast %325 : vector<1x128xf32> to vector<16x128xf32>
    %327 = arith.addf %323, %326 : vector<16x128xf32>
    %328 = math.absf %327 : vector<16x128xf32>
    %cst_158 = arith.constant 0.707106769 : f32
    %329 = vector.broadcast %cst_158 : f32 to vector<16x128xf32>
    %330 = arith.mulf %328, %329 : vector<16x128xf32>
    %cst_159 = arith.constant 0.327591091 : f32
    %331 = vector.broadcast %cst_159 : f32 to vector<16x128xf32>
    %332 = arith.mulf %331, %330 : vector<16x128xf32>
    %cst_160 = arith.constant 1.000000e+00 : f32
    %333 = vector.broadcast %cst_160 : f32 to vector<16x128xf32>
    %334 = arith.addf %333, %332 : vector<16x128xf32>
    %cst_161 = arith.constant 1.000000e+00 : f32
    %335 = vector.broadcast %cst_161 : f32 to vector<16x128xf32>
    %336 = arith.divf %335, %334 : vector<16x128xf32>
    %cst_162 = arith.constant 1.06140542 : f32
    %337 = vector.broadcast %cst_162 : f32 to vector<16x128xf32>
    %338 = arith.mulf %336, %337 : vector<16x128xf32>
    %cst_163 = arith.constant -1.45315206 : f32
    %339 = vector.broadcast %cst_163 : f32 to vector<16x128xf32>
    %340 = arith.addf %339, %338 : vector<16x128xf32>
    %341 = arith.mulf %336, %340 : vector<16x128xf32>
    %cst_164 = arith.constant 1.42141378 : f32
    %342 = vector.broadcast %cst_164 : f32 to vector<16x128xf32>
    %343 = arith.addf %342, %341 : vector<16x128xf32>
    %344 = arith.mulf %336, %343 : vector<16x128xf32>
    %cst_165 = arith.constant -0.284496725 : f32
    %345 = vector.broadcast %cst_165 : f32 to vector<16x128xf32>
    %346 = arith.addf %345, %344 : vector<16x128xf32>
    %347 = arith.mulf %336, %346 : vector<16x128xf32>
    %cst_166 = arith.constant 0.254829586 : f32
    %348 = vector.broadcast %cst_166 : f32 to vector<16x128xf32>
    %349 = arith.addf %348, %347 : vector<16x128xf32>
    %350 = arith.mulf %336, %349 : vector<16x128xf32>
    %cst_167 = arith.constant 0.000000e+00 : f32
    %351 = vector.broadcast %cst_167 : f32 to vector<16x128xf32>
    %352 = arith.subf %351, %330 : vector<16x128xf32>
    %353 = arith.mulf %352, %330 : vector<16x128xf32>
    %354 = math.exp %353 : vector<16x128xf32>
    %355 = arith.mulf %350, %354 : vector<16x128xf32>
    %cst_168 = arith.constant 1.000000e+00 : f32
    %356 = vector.broadcast %cst_168 : f32 to vector<16x128xf32>
    %357 = arith.subf %356, %355 : vector<16x128xf32>
    %cst_169 = arith.constant 0.000000e+00 : f32
    %358 = vector.broadcast %cst_169 : f32 to vector<16x128xf32>
    %359 = arith.cmpf oge, %327, %358 : vector<16x128xf32>
    %cst_170 = arith.constant 0.000000e+00 : f32
    %360 = vector.broadcast %cst_170 : f32 to vector<16x128xf32>
    %361 = arith.subf %360, %357 : vector<16x128xf32>
    %362 = arith.select %359, %357, %361 : vector<16x128xi1>, vector<16x128xf32>
    %cst_171 = arith.constant 5.000000e-01 : f32
    %363 = vector.broadcast %cst_171 : f32 to vector<16x128xf32>
    %364 = arith.mulf %363, %327 : vector<16x128xf32>
    %cst_172 = arith.constant 1.000000e+00 : f32
    %365 = vector.broadcast %cst_172 : f32 to vector<16x128xf32>
    %366 = arith.addf %365, %362 : vector<16x128xf32>
    %367 = arith.mulf %364, %366 : vector<16x128xf32>
    %c1_173 = arith.constant 1 : index
    %c0_174 = arith.constant 0 : index
    %c0_175 = arith.constant 0 : index
    %368 = vector.load %arg12[%c1_173, %c0_174, %c0_175] : memref<2x128x32xf32, #tpu.memory_space<vmem>>, vector<1x128x32xf32>
    %369 = vector.shape_cast %368 : vector<1x128x32xf32> to vector<128x32xf32>
    %cst_176 = arith.constant dense<0.000000e+00> : vector<16x32xf32>
    %370 = tpu.matmul %367, %369, %cst_176 {dimension_numbers = #tpu.dot_dimension_numbers<[1], [0], [0], [1], [0, 0, 1, 1], [], []>} : vector<16x128xf32>, vector<128x32xf32>, vector<16x32xf32> -> vector<16x32xf32>
    %371 = arith.addf %294, %370 : vector<16x32xf32>
    %c1_177 = arith.constant 1 : index
    %c0_178 = arith.constant 0 : index
    %c0_179 = arith.constant 0 : index
    %372 = vector.load %arg13[%c1_177, %c0_178, %c0_179] : memref<2x1x32xf32, #tpu.memory_space<vmem>>, vector<1x1x32xf32>
    %373 = vector.shape_cast %372 : vector<1x1x32xf32> to vector<1x32xf32>
    %374 = vector.broadcast %373 : vector<1x32xf32> to vector<16x32xf32>
    %375 = arith.addf %371, %374 : vector<16x32xf32>
    %c0_180 = arith.constant 0 : index
    %c0_181 = arith.constant 0 : index
    %376 = vector.load %arg14[%c0_180, %c0_181] : memref<1x32xf32, #tpu.memory_space<vmem>>, vector<1x32xf32>
    %c0_182 = arith.constant 0 : index
    %c0_183 = arith.constant 0 : index
    %377 = vector.load %arg15[%c0_182, %c0_183] : memref<1x32xf32, #tpu.memory_space<vmem>>, vector<1x32xf32>
    %cst_184 = arith.constant dense<0.000000e+00> : vector<16xf32>
    %378 = vector.multi_reduction <add>, %375, %cst_184 [1] : vector<16x32xf32> to vector<16xf32>
    %379 = vector.shape_cast %378 : vector<16xf32> to vector<16x1xf32>
    %cst_185 = arith.constant 3.200000e+01 : f32
    %380 = vector.broadcast %cst_185 : f32 to vector<16x1xf32>
    %381 = arith.divf %379, %380 : vector<16x1xf32>
    %382 = vector.broadcast %381 : vector<16x1xf32> to vector<16x32xf32>
    %383 = arith.subf %375, %382 : vector<16x32xf32>
    %384 = arith.mulf %383, %383 : vector<16x32xf32>
    %cst_186 = arith.constant dense<0.000000e+00> : vector<16xf32>
    %385 = vector.multi_reduction <add>, %384, %cst_186 [1] : vector<16x32xf32> to vector<16xf32>
    %386 = vector.shape_cast %385 : vector<16xf32> to vector<16x1xf32>
    %cst_187 = arith.constant 3.200000e+01 : f32
    %387 = vector.broadcast %cst_187 : f32 to vector<16x1xf32>
    %388 = arith.divf %386, %387 : vector<16x1xf32>
    %389 = vector.broadcast %381 : vector<16x1xf32> to vector<16x32xf32>
    %390 = arith.subf %375, %389 : vector<16x32xf32>
    %cst_188 = arith.constant 9.99999997E-7 : f32
    %391 = vector.broadcast %cst_188 : f32 to vector<16x1xf32>
    %392 = arith.addf %388, %391 : vector<16x1xf32>
    %393 = math.rsqrt %392 : vector<16x1xf32>
    %394 = vector.broadcast %393 : vector<16x1xf32> to vector<16x32xf32>
    %395 = arith.mulf %390, %394 : vector<16x32xf32>
    %396 = vector.broadcast %376 : vector<1x32xf32> to vector<16x32xf32>
    %397 = arith.mulf %395, %396 : vector<16x32xf32>
    %398 = vector.broadcast %377 : vector<1x32xf32> to vector<16x32xf32>
    %399 = arith.addf %397, %398 : vector<16x32xf32>
    %c0_189 = arith.constant 0 : index
    %c0_190 = arith.constant 0 : index
    %400 = vector.load %arg16[%c0_189, %c0_190] : memref<32x2xf32, #tpu.memory_space<vmem>>, vector<32x2xf32>
    %cst_191 = arith.constant dense<0.000000e+00> : vector<16x2xf32>
    %401 = tpu.matmul %399, %400, %cst_191 {dimension_numbers = #tpu.dot_dimension_numbers<[1], [0], [0], [1], [0, 0, 1, 1], [], []>} : vector<16x32xf32>, vector<32x2xf32>, vector<16x2xf32> -> vector<16x2xf32>
    %c0_192 = arith.constant 0 : index
    %c0_193 = arith.constant 0 : index
    %402 = vector.load %arg17[%c0_192, %c0_193] : memref<1x2xf32, #tpu.memory_space<vmem>>, vector<1x2xf32>
    %403 = vector.broadcast %402 : vector<1x2xf32> to vector<16x2xf32>
    %404 = arith.addf %401, %403 : vector<16x2xf32>
    %c0_194 = arith.constant 0 : index
    %c0_195 = arith.constant 0 : index
    %405 = vector.load %arg18[%c0_194, %c0_195] : memref<16x2xf32, #tpu.memory_space<vmem>>, vector<16x2xf32>
    tpu.vector_store %arg18[%c0_194, %c0_195], %404 {strides = array<i32>} : memref<16x2xf32, #tpu.memory_space<vmem>>, vector<16x2xf32>,
    return
  }
}

</mosaic_0001>

<bundles_post_ra>
// kernel: tpu_custom_call.1
= control target key start
LH: loop header
LB: loop body
LE: loop exit
PB: predicated region body
PF: predicated region fallthrough
CT: control target
= control target key end

     0   :  { %vm65_vm0 = vcmask 261120   ;;  %vm207_vm1 = vcmask 64512   ;;  %s3848_s21 = smov 88   ;;  %s3849_s22 = smov 120   ;;  %vm291_vm3 = vcmask 130048   ;;  %vm611_vm4 = vcmask 130112   ;;  %s4527_s0 = inlined_call_operand.vmem [shape: f32[16,32], index: 0, kind: input, shape index: {}]   ;;  %s4528_s6 = inlined_call_operand.vmem [shape: f32[2,32,96], index: 6, kind: input, shape index: {}]   ;;  %s4529_s2 = inlined_call_operand.vmem [shape: f32[2,1,32], index: 2, kind: input, shape index: {}]   ;;  %s4530_s3 = inlined_call_operand.vmem [shape: f32[2,1,32], index: 3, kind: input, shape index: {}]   ;;  %s4531_s7 = inlined_call_operand.vmem [shape: f32[2,1,96], index: 7, kind: input, shape index: {}]   ;;  %s4532_s1 = inlined_call_operand.vmem [shape: f32[16,16], index: 1, kind: input, shape index: {}]   ;;  %s4533_s8 = inlined_call_operand.vmem [shape: f32[2,32,32], index: 8, kind: input, shape index: {}]   ;;  %s4534_s9 = inlined_call_operand.vmem [shape: f32[2,1,32], index: 9, kind: input, shape index: {}]   ;;  %s4535_s10 = inlined_call_operand.vmem [shape: f32[2,32,128], index: 10, kind: input, shape index: {}]   ;;  %s4536_s4 = inlined_call_operand.vmem [shape: f32[2,1,32], index: 4, kind: input, shape index: {}]   ;;  %s4537_s5 = inlined_call_operand.vmem [shape: f32[2,1,32], index: 5, kind: input, shape index: {}]   ;;  %s4538_s12 = inlined_call_operand.vmem [shape: f32[2,128,32], index: 12, kind: input, shape index: {}]   ;;  %s4539_s11 = inlined_call_operand.vmem [shape: f32[2,1,128], index: 11, kind: input, shape index: {}]   ;;  %s4540_s13 = inlined_call_operand.vmem [shape: f32[2,1,32], index: 13, kind: input, shape index: {}]   ;;  %s4541_s16 = inlined_call_operand.vmem [shape: f32[32,2], index: 16, kind: input, shape index: {}]   ;;  %s4542_s14 = inlined_call_operand.vmem [shape: f32[1,32], index: 14, kind: input, shape index: {}]   ;;  %s4543_s15 = inlined_call_operand.vmem [shape: f32[1,32], index: 15, kind: input, shape index: {}]   ;;  %s4544_s17 = inlined_call_operand.vmem [shape: f32[1,2], index: 17, kind: input, shape index: {}]   ;;  %s4545_s18 = inlined_call_operand.vmem [shape: f32[16,2], index: 18, kind: output, shape index: {}]  }
   0x1   :  { %4562 = sst [smem:[#allocation3_spill]] %s4527_s0  ;;  %v2934_v29 = vld [vmem:[%s4530_s3] ss:$0 sm:$0xff]  ;;  %vm4017_vm2 = vmpackc.low %vm207_vm1, %vm207_vm1  ;;  %v4035_v49 = vld [vmem:[%s4532_s1 + $0x8] sm:$0xff]  ;;  %s4559_s26 = smov 64   ;;  %vm822_vm5 = vcmask 195712  }
   0x2   :  { %4563 = sst [smem:[#allocation4_spill]] %s4528_s6  ;;  %s4565_s29 = sld [smem:[#allocation3_spill]]  ;;  %v2935_v36 = vld [vmem:[%s4531_s7] ss:$0 sm:$0xff]  ;;  %vm1033_vm6 = vcmask 261312   ;;  %vm2926_vm11 = vcmask 15360  }
   0x3   :  { %4564 = sst [smem:[#allocation5_spill]] %s4529_s2  ;;  %s4566_s20 = sld [smem:[#allocation4_spill]]  ;;  %v4030_v47 = vld [vmem:[%s4532_s1] sm:$0xff] }
   0x4   :  { %s4567_s28 = sld [smem:[#allocation5_spill]]  ;;  %s3847_s6 = smov 96  }
   0x5   :  { %s4557_s27 = smov 56   ;;  %s3853_s30 = smov 80  }
   0x6   :  { %s4558_s0 = smov 48   ;;  %s4554_s19 = smov 104  }
   0x7   :  { %s4556_s2 = smov 72   ;;  %s4551_s23 = smov 40  }
   0x8   :  { %v3959_v0 = vld [vmem:[%s4565_s29] sm:$0xff]  ;;  %v3964_v1 = vld [vmem:[%s4565_s29 + $0x8] sm:$0xff]  ;;  %s3852_s29 = smov 112   ;;  %s4552_s24 = smov 8  }
   0x9   :  { %v66_v2 = vsel %vm65_vm0, %v3959_v0, 0.0  ;;  %v69_v3 = vsel %vm65_vm0, %v3964_v1, 0.0  ;;  %v109_v14 = vld [vmem:[%s4566_s20] sm:$0xff]  ;;  %v110_v15 = vld [vmem:[%s4566_s20 + $0x8] sm:$0xff]  ;;  %v111_v16 = vld [vmem:[%s4566_s20 + $0x10] sm:$0xff]  ;;  %s4549_s25 = smov 16  }
   0xa   :  { %67 = vadd.xlane.f32.xlu0 %v66_v2  ;;  %v3451_v17 = vpack.c.bf16 %v110_v15, %v109_v14  ;;  %v112_v18 = vld [vmem:[%s4566_s20 + $0x18] sm:$0xff]  ;;  %v2933_v27 = vld [vmem:[%s4567_s28] ss:$0 sm:$0xff] }
   0xb   :  { %v3455_v19 = vpack.c.bf16 %v112_v18, %v111_v16 }
   0xc   :  { %3452 = vmatprep.subr.bf16.mxu1 %v3451_v17 }
   0xd   :  { %3454 = vmatpush3.bf16.msra.mxu1 %v3451_v17 }
   0xe   :  { %70 = vadd.xlane.f32.xlu0 %v69_v3  ;;  %3456 = vmatprep.subr.bf16.mxu1 %v3455_v19 }
  0x11   :  { %3458 = vmatpush3.bf16.msra.mxu1 %v3455_v19 }
  0x97   :  { %v68_v4 = vpop.xlane.xlu0 %67 }
  0x98   :  { %v73_v5 = vmul.f32 0.03125, %v68_v4 }
  0x9a   :  { %v75_v6 = vsub.f32 %v3959_v0, %v73_v5 }
  0x9b   :  { %v71_v7 = vpop.xlane.xlu0 %70 }
  0x9c   :  { %v74_v8 = vmul.f32 0.03125, %v71_v7  ;;  %v77_v9 = vmul.f32 %v75_v6, %v75_v6 }
  0x9e   :  { %v76_v10 = vsub.f32 %v3964_v1, %v74_v8  ;;  %v79_v11 = vsel %vm65_vm0, %v77_v9, 0.0 }
  0x9f   :  { %80 = vadd.xlane.f32.xlu1 %v79_v11 }
  0xa0   :  { %v78_v12 = vmul.f32 %v76_v10, %v76_v10 }
  0xa2   :  { %v82_v13 = vsel %vm65_vm0, %v78_v12, 0.0 }
  0xa3   :  { %83 = vadd.xlane.f32.xlu1 %v82_v13 }
 0x12c   :  { %v81_v20 = vpop.xlane.xlu1 %80 }
 0x12d   :  { %v85_v21 = vmul.f32 0.03125, %v81_v20 }
 0x12f   :  { %v87_v22 = vadd.f32 1e-06, %v85_v21 }
 0x130   :  { %v84_v23 = vpop.xlane.xlu1 %83 }
 0x131   :  { %3745 = vrsqrt.f32 %v87_v22  ;;  %v86_v24 = vmul.f32 0.03125, %v84_v23 }
 0x133   :  { %v88_v25 = vadd.f32 1e-06, %v86_v24 }
 0x135   :  { %3747 = vrsqrt.f32 %v88_v25 }
 0x13b   :  { %v3746_v26 = vpop.eup %3745 }
 0x13c   :  { %v91_v28 = vmul.f32 %v3746_v26, %v75_v6 }
 0x13e   :  { %v99_v30 = vmul.f32 %v2933_v27, %v91_v28 }
 0x13f   :  { %v3748_v31 = vpop.eup %3747 }
 0x140   :  { %v92_v32 = vmul.f32 %v3748_v31, %v76_v10  ;;  %v107_v33 = vadd.f32 %v2934_v29, %v99_v30 }
 0x142   :  { %v100_v34 = vmul.f32 %v2933_v27, %v92_v32  ;;  %3200 = vmatprep.mubr.msk.f32.mxu1 %vm65_vm0, %v107_v33 }
 0x144   :  { %v108_v35 = vadd.f32 %v2934_v29, %v100_v34 }
 0x146   :  { %3201 = vmatmul.mubr.msk.f32.vlgmr.msra.gmra.mrb[0].mxu1 %vm65_vm0, %v108_v35 }
 0x219   :  { %v3202_v37 = vpop.f32.mrb[0].mxu1 }
 0x21a   :  { %v3997_v38 = vadd.f32 %v3202_v37, %v2935_v36  ;;  %v192_v39 = vpop.f32.mrb[1].mxu1 }
 0x21b   :  { %v3999_v40 = vadd.f32 %v2935_v36, %v192_v39 }
 0x21d   :  { %3207 = vmatprep.mubr.msk.f32.mxu1 %vm207_vm1, %v3999_v40  ;;  %v4005_v41 = vpack.i.bf16 %v3997_v38, %v3999_v40 }
 0x21f   :  { %3666 = vrot.lane.b32.xlu0 %v4005_v41, %s3847_s6 }
 0x223   :  { %3676 = vrot.lane.b32.xlu0 %v4005_v41, %s3848_s21 }
 0x227   :  { %403 = vrot.lane.b32.xlu0 %v3999_v40, %s3849_s22 }
 0x22b   :  { %405 = vrot.lane.b32.xlu0 %v3997_v38, %s3849_s22 }
 0x291   :  { %v3667_v42 = vpop.permute.xlu0 %3666 }
 0x292   :  { %v3669_v43 = vunpack.i.h.bf16 %v3667_v42  ;;  %v3668_v44 = vunpack.i.l.bf16 %v3667_v42 }
 0x294   :  { %v3459_v46 = vpack.c.bf16 %v3669_v43, %v3668_v44 }
 0x295   :  { %v3677_v5 = vpop.permute.xlu0 %3676 }
 0x296   :  { %3461 = vmatprep.subr.msk.bf16.mxu1 %vm4017_vm2, %v3459_v46  ;;  %v3679_v7 = vunpack.i.h.bf16 %v3677_v5  ;;  %v3678_v8 = vunpack.i.l.bf16 %v3677_v5 }
 0x297   :  { %3464 = vmatpush3.bf16.xpose.msk.msra.mxu1 %vm4017_vm2, %v3459_v46 }
 0x298   :  { %v3469_v12 = vpack.c.bf16 %v3679_v7, %v3678_v8 }
 0x299   :  { %v404_v17 = vpop.permute.xlu0 %403 }
 0x29d   :  { %v406_v18 = vpop.permute.xlu0 %405 }
 0x29e   :  { %3208 = vmatmul.mubr.msk.f32.vlgmr.msra.gmra.mrb[2].mxu1 %vm207_vm1, %v3997_v38 }
 0x371   :  { %v3209_v48 = vpop.f32.mrb[2].mxu1 }
 0x372   :  { %v282_v50 = vpop.f32.mrb[3].mxu1  ;;  %v288_v52 = vadd.f32 %v3209_v48, %v4035_v49 }
 0x373   :  { %v283_v51 = vadd.f32 %v282_v50, %v4030_v47 }
 0x374   :  { %v295_v54 = vsel %vm291_vm3, %v288_v52, -inf }
 0x375   :  { %v292_v53 = vsel %vm291_vm3, %v283_v51, -inf }
 0x376   :  { %293 = vmax.xlane.f32.xlu1 %v292_v53 }
 0x37a   :  { %296 = vmax.xlane.f32.xlu1 %v295_v54 }
 0x403   :  { %v294_v55 = vpop.xlane.xlu1 %293 }
 0x404   :  { %v298_v56 = vsub.f32 %v283_v51, %v294_v55 }
 0x406   :  { %v300_v59 = vmul.f32 1.442695, %v298_v56 }
 0x407   :  { %v297_v57 = vpop.xlane.xlu1 %296 }
 0x408   :  { %v299_v58 = vsub.f32 %v288_v52, %v297_v57 }
 0x40a   :  { %v302_v60 = vmul.f32 1.442695, %v299_v58 }
 0x40c   :  { %3749 = vpow2.f32 %v302_v60 }
 0x40d   :  { %3751 = vpow2.f32 %v300_v59 }
 0x416   :  { %v3750_v61 = vpop.eup %3749 }
 0x417   :  { %v307_v62 = vsel %vm291_vm3, %v3750_v61, 0.0  ;;  %v3752_v63 = vpop.eup %3751 }
 0x418   :  { %308 = vadd.xlane.f32.xlu1 %v307_v62  ;;  %v304_v2 = vsel %vm291_vm3, %v3752_v63, 0.0 }
 0x41c   :  { %305 = vadd.xlane.f32.xlu1 %v304_v2 }
 0x42d   :  { %3671 = vrot.lane.b32.xlu1 %v4005_v41, %s4559_s26  ;;  %s4576_s26 = smov 8  }
 0x4a5   :  { %v309_v3 = vpop.xlane.xlu1 %308 }
 0x4a6   :  { %3753 = vrcp.f32 %v309_v3 }
 0x4a9   :  { %v306_v4 = vpop.xlane.xlu1 %305 }
 0x4aa   :  { %3755 = vrcp.f32 %v306_v4 }
 0x4ad   :  { %v3672_v6 = vpop.permute.xlu1 %3671 }
 0x4ae   :  { %v3674_v9 = vunpack.i.h.bf16 %v3672_v6  ;;  %v3673_v10 = vunpack.i.l.bf16 %v3672_v6 }
 0x4b0   :  { %v3465_v11 = vpack.c.bf16 %v3674_v9, %v3673_v10  ;;  %v3754_v13 = vpop.eup %3753 }
 0x4b1   :  { %v313_v16 = vmul.f32 %v3754_v13, %v3750_v61 }
 0x4b2   :  { %3466 = vmatprep.subr.bf16.mxu1 %v3465_v11 }
 0x4b3   :  { %3468 = vmatpush3.bf16.msra.mxu1 %v3465_v11 }
 0x4b4   :  { %v3756_v14 = vpop.eup %3755  ;;  %3471 = vmatprep.subr.msk.bf16.mxu1 %vm4017_vm2, %v3469_v12 }
 0x4b5   :  { %v311_v15 = vmul.f32 %v3756_v14, %v3752_v63 }
 0x4b7   :  { %3214 = vmatprep.mubr.msk.f32.mxu1 %vm291_vm3, %v311_v15 }
 0x4b8   :  { %3215 = vmatmul.mubr.msk.f32.vlgmr.msra.gmra.mrb[4].mxu1 %vm291_vm3, %v313_v16 }
 0x4b9   :  { %3221 = vmatprep.mubr.msk.f32.mxu1 %vm207_vm1, %v404_v17 }
 0x4bc   :  { %3474 = vmatpush3.bf16.xpose.msk.msra.mxu1 %vm4017_vm2, %v3469_v12 }
 0x4c3   :  { %3222 = vmatmul.mubr.msk.f32.vlgmr.msra.gmra.mrb[6].mxu1 %vm207_vm1, %v406_v18 }
 0x58b   :  { %v3216_v19 = vpop.f32.mrb[4].mxu1 }
 0x58c   :  { %402 = vst.msk [vmem:[#allocation2 + $0x8] sm:$0xff] %vm207_vm1, %v3216_v19  ;;  %v392_v20 = vpop.f32.mrb[5].mxu1 }
 0x58d   :  { %401 = vst.msk [vmem:[#allocation2] sm:$0xff] %vm207_vm1, %v392_v20 }
 0x596   :  { %v3223_v21 = vpop.f32.mrb[6].mxu1 }
 0x597   :  { %v491_v22 = vadd.f32 %v3223_v21, %v4035_v49  ;;  %v485_v23 = vpop.f32.mrb[7].mxu1 }
 0x598   :  { %v486_v24 = vadd.f32 %v485_v23, %v4030_v47 }
 0x599   :  { %v497_v25 = vsel %vm291_vm3, %v491_v22, -inf }
 0x59a   :  { %498 = vmax.xlane.f32.xlu0 %v497_v25  ;;  %v494_v26 = vsel %vm291_vm3, %v486_v24, -inf }
 0x59b   :  { %495 = vmax.xlane.f32.xlu1 %v494_v26 }
 0x5ac   :  { %3681 = vrot.lane.b32.xlu1 %v4005_v41, %s4557_s27  ;;  %s4577_s27 = smov 16  }
 0x5b0   :  { %614 = vrot.lane.b32.xlu1 %v3999_v40, %s3852_s29 }
 0x5b4   :  { %616 = vrot.lane.b32.xlu1 %v3997_v38, %s3852_s29 }
 0x627   :  { %v499_v27 = vpop.xlane.xlu0 %498 }
 0x628   :  { %v501_v28 = vsub.f32 %v491_v22, %v499_v27  ;;  %v496_v29 = vpop.xlane.xlu1 %495 }
 0x629   :  { %v500_v30 = vsub.f32 %v486_v24, %v496_v29 }
 0x62a   :  { %v504_v31 = vmul.f32 1.442695, %v501_v28 }
 0x62b   :  { %v502_v32 = vmul.f32 1.442695, %v500_v30 }
 0x62c   :  { %3757 = vpow2.f32 %v504_v31  ;;  %v3682_v33 = vpop.permute.xlu1 %3681 }
 0x62d   :  { %v3684_v34 = vunpack.i.h.bf16 %v3682_v33  ;;  %v3683_v35 = vunpack.i.l.bf16 %v3682_v33  ;;  %3759 = vpow2.f32 %v502_v32 }
 0x62f   :  { %v3475_v36 = vpack.c.bf16 %v3684_v34, %v3683_v35 }
 0x630   :  { %v615_v57 = vpop.permute.xlu1 %614 }
 0x631   :  { %3476 = vmatprep.subr.bf16.mxu0 %v3475_v36 }
 0x632   :  { %3478 = vmatpush3.bf16.msra.mxu0 %v3475_v36 }
 0x634   :  { %v617_v58 = vpop.permute.xlu1 %616 }
 0x636   :  { %v3758_v37 = vpop.eup %3757 }
 0x637   :  { %v509_v39 = vsel %vm291_vm3, %v3758_v37, 0.0  ;;  %v3760_v42 = vpop.eup %3759 }
 0x638   :  { %510 = vadd.xlane.f32.xlu0 %v509_v39  ;;  %v506_v43 = vsel %vm291_vm3, %v3760_v42, 0.0 }
 0x63c   :  { %507 = vadd.xlane.f32.xlu0 %v506_v43 }
 0x652   :  { %3686 = vrot.lane.b32.xlu0 %v4005_v41, %s3853_s30 }
 0x6c5   :  { %v511_v44 = vpop.xlane.xlu0 %510 }
 0x6c6   :  { %3761 = vrcp.f32 %v511_v44 }
 0x6c9   :  { %v508_v46 = vpop.xlane.xlu0 %507 }
 0x6ca   :  { %3763 = vrcp.f32 %v508_v46 }
 0x6cd   :  { %v3687_v48 = vpop.permute.xlu0 %3686 }
 0x6ce   :  { %v3689_v50 = vunpack.i.h.bf16 %v3687_v48  ;;  %v3688_v51 = vunpack.i.l.bf16 %v3687_v48 }
 0x6d0   :  { %v3479_v52 = vpack.c.bf16 %v3689_v50, %v3688_v51  ;;  %v3762_v53 = vpop.eup %3761 }
 0x6d1   :  { %v515_v56 = vmul.f32 %v3762_v53, %v3758_v37 }
 0x6d2   :  { %3481 = vmatprep.subr.msk.bf16.mxu0 %vm4017_vm2, %v3479_v52 }
 0x6d4   :  { %v3764_v54 = vpop.eup %3763 }
 0x6d5   :  { %v513_v55 = vmul.f32 %v3764_v54, %v3760_v42 }
 0x6d7   :  { %3228 = vmatprep.mubr.msk.f32.mxu0 %vm291_vm3, %v513_v55 }
 0x6d8   :  { %3229 = vmatmul.mubr.msk.f32.vlgmr.msra.gmra.mrb[0].mxu0 %vm291_vm3, %v515_v56 }
 0x6d9   :  { %3484 = vmatpush3.bf16.xpose.msk.msra.mxu0 %vm4017_vm2, %v3479_v52  ;;  %3235 = vmatprep.mubr.msk.f32.mxu0 %vm207_vm1, %v615_v57 }
 0x6e0   :  { %3236 = vmatmul.mubr.msk.f32.vlgmr.msra.gmra.mrb[2].mxu0 %vm207_vm1, %v617_v58 }
 0x7ab   :  { %v4077_v59 = vpop.f32.mrb[0].mxu0 }
 0x7ac   :  { %v4079_v60 = vpop.f32.mrb[1].mxu0 }
 0x7b3   :  { %v3237_v61 = vpop.f32.mrb[2].mxu0 }
 0x7b4   :  { %v702_v62 = vadd.f32 %v3237_v61, %v4035_v49  ;;  %v696_v63 = vpop.f32.mrb[3].mxu0 }
 0x7b5   :  { %v697_v2 = vadd.f32 %v696_v63, %v4030_v47 }
 0x7b6   :  { %v708_v3 = vsel %vm291_vm3, %v702_v62, -inf }
 0x7b7   :  { %709 = vmax.xlane.f32.xlu0 %v708_v3  ;;  %v705_v4 = vsel %vm291_vm3, %v697_v2, -inf }
 0x7b8   :  { %706 = vmax.xlane.f32.xlu1 %v705_v4 }
 0x7c9   :  { %3691 = vrot.lane.b32.xlu1 %v4005_v41, %s4558_s0 }
 0x7cd   :  { %825 = vrot.lane.b32.xlu1 %v3999_v40, %s4554_s19 }
 0x7d1   :  { %827 = vrot.lane.b32.xlu1 %v3997_v38, %s4554_s19 }
 0x844   :  { %v710_v5 = vpop.xlane.xlu0 %709 }
 0x845   :  { %v712_v6 = vsub.f32 %v702_v62, %v710_v5  ;;  %v707_v7 = vpop.xlane.xlu1 %706  ;;  %v1039_v5 = vld [vmem:[%s4533_s8 + $0x8] sm:$0xff] }
 0x846   :  { %v711_v8 = vsub.f32 %v697_v2, %v707_v7  ;;  %v1040_v7 = vld [vmem:[%s4533_s8 + $0x10] sm:$0xff] }
 0x847   :  { %v715_v9 = vmul.f32 1.442695, %v712_v6 }
 0x848   :  { %v713_v10 = vmul.f32 1.442695, %v711_v8  ;;  %v1041_v8 = vld [vmem:[%s4533_s8 + $0x18] sm:$0xff] }
 0x849   :  { %3765 = vpow2.f32 %v715_v9  ;;  %v3692_v11 = vpop.permute.xlu1 %3691  ;;  %v3503_v9 = vpack.c.bf16 %v1041_v8, %v1040_v7  ;;  %v1330_v8 = vld [vmem:[%s4538_s12 + $0x40] sm:$0xff] }
 0x84a   :  { %v3694_v12 = vunpack.i.h.bf16 %v3692_v11  ;;  %v3693_v13 = vunpack.i.l.bf16 %v3692_v11  ;;  %3767 = vpow2.f32 %v713_v10 }
 0x84c   :  { %v3485_v14 = vpack.c.bf16 %v3694_v12, %v3693_v13 }
 0x84d   :  { %v826_v27 = vpop.permute.xlu1 %825 }
 0x84e   :  { %3486 = vmatprep.subr.bf16.mxu1 %v3485_v14 }
 0x84f   :  { %3488 = vmatpush3.bf16.msra.mxu1 %v3485_v14 }
 0x851   :  { %v828_v28 = vpop.permute.xlu1 %827 }
 0x853   :  { %v3766_v15 = vpop.eup %3765 }
 0x854   :  { %v720_v40 = vsel %vm291_vm3, %v3766_v15, 0.0  ;;  %v3768_v16 = vpop.eup %3767 }
 0x855   :  { %721 = vadd.xlane.f32.xlu0 %v720_v40  ;;  %v717_v38 = vsel %vm291_vm3, %v3768_v16, 0.0  ;;  %v2962_v40 = vld [vmem:[%s4534_s9] ss:$0 sm:$0xff] }
 0x859   :  { %718 = vadd.xlane.f32.xlu0 %v717_v38 }
 0x86f   :  { %3696 = vrot.lane.b32.xlu0 %v4005_v41, %s4556_s2 }
 0x8e2   :  { %v722_v17 = vpop.xlane.xlu0 %721 }
 0x8e3   :  { %3769 = vrcp.f32 %v722_v17 }
 0x8e6   :  { %v719_v18 = vpop.xlane.xlu0 %718 }
 0x8e7   :  { %3771 = vrcp.f32 %v719_v18 }
 0x8ea   :  { %v3697_v19 = vpop.permute.xlu0 %3696 }
 0x8eb   :  { %v3699_v20 = vunpack.i.h.bf16 %v3697_v19  ;;  %v3698_v21 = vunpack.i.l.bf16 %v3697_v19 }
 0x8ed   :  { %v3489_v22 = vpack.c.bf16 %v3699_v20, %v3698_v21  ;;  %v3770_v23 = vpop.eup %3769 }
 0x8ee   :  { %v726_v26 = vmul.f32 %v3770_v23, %v3766_v15 }
 0x8ef   :  { %3491 = vmatprep.subr.msk.bf16.mxu1 %vm4017_vm2, %v3489_v22 }
 0x8f1   :  { %v3772_v24 = vpop.eup %3771 }
 0x8f2   :  { %v724_v25 = vmul.f32 %v3772_v24, %v3768_v16 }
 0x8f4   :  { %3242 = vmatprep.mubr.msk.f32.mxu1 %vm291_vm3, %v724_v25 }
 0x8f5   :  { %3243 = vmatmul.mubr.msk.f32.vlgmr.msra.gmra.mrb[8].mxu1 %vm291_vm3, %v726_v26 }
 0x8f6   :  { %3494 = vmatpush3.bf16.xpose.msk.msra.mxu1 %vm4017_vm2, %v3489_v22  ;;  %3249 = vmatprep.mubr.msk.f32.mxu1 %vm207_vm1, %v826_v27 }
 0x8fd   :  { %3250 = vmatmul.mubr.msk.f32.vlgmr.msra.gmra.mrb[10].mxu1 %vm207_vm1, %v828_v28 }
 0x9c8   :  { %v3244_v29 = vpop.f32.mrb[8].mxu1 }
 0x9c9   :  { %v805_v30 = vpop.f32.mrb[9].mxu1 }
 0x9d0   :  { %v3251_v31 = vpop.f32.mrb[10].mxu1 }
 0x9d1   :  { %v913_v32 = vadd.f32 %v3251_v31, %v4035_v49  ;;  %v907_v33 = vpop.f32.mrb[11].mxu1  ;;  %v1176_v31 = vld [vmem:[%s4535_s10] sm:$0xff] }
 0x9d2   :  { %v908_v34 = vadd.f32 %v907_v33, %v4030_v47 }
 0x9d3   :  { %v919_v35 = vsel %vm291_vm3, %v913_v32, -inf }
 0x9d4   :  { %920 = vmax.xlane.f32.xlu0 %v919_v35  ;;  %v916_v36 = vsel %vm291_vm3, %v908_v34, -inf  ;;  %v1179_v35 = vld [vmem:[%s4535_s10 + $0x18] sm:$0xff] }
 0x9d5   :  { %917 = vmax.xlane.f32.xlu1 %v916_v36 }
 0x9e6   :  { %3701 = vrot.lane.b32.xlu1 %v4005_v41, %s4551_s23  ;;  %s4560_s23 = smov 24  }
 0x9ea   :  { %607 = vrot.lane.b32.xlu1 %v4077_v59, %s4552_s24 }
 0x9ee   :  { %816 = vrot.lane.b32.xlu1 %v805_v30, %s4549_s25 }
 0x9f2   :  { %818 = vrot.lane.b32.xlu1 %v3244_v29, %s4549_s25  ;;  %s4575_s25 = smov 40  }
 0xa61   :  { %v921_v37 = vpop.xlane.xlu0 %920 }
 0xa62   :  { %v923_v39 = vsub.f32 %v913_v32, %v921_v37  ;;  %v918_v42 = vpop.xlane.xlu1 %917  ;;  %v1177_v32 = vld [vmem:[%s4535_s10 + $0x8] sm:$0xff] }
 0xa63   :  { %v922_v43 = vsub.f32 %v908_v34, %v918_v42  ;;  %v3507_v33 = vpack.c.bf16 %v1177_v32, %v1176_v31  ;;  %v1178_v34 = vld [vmem:[%s4535_s10 + $0x10] sm:$0xff] }
 0xa64   :  { %v926_v44 = vmul.f32 1.442695, %v923_v39  ;;  %v3511_v36 = vpack.c.bf16 %v1179_v35, %v1178_v34 }
 0xa65   :  { %v924_v46 = vmul.f32 1.442695, %v922_v43  ;;  %3508 = vmatprep.subr.bf16.mxu1 %v3507_v33 }
 0xa66   :  { %v3702_v48 = vpop.permute.xlu1 %3701  ;;  %3510 = vmatpush3.bf16.msra.mxu1 %v3507_v33 }
 0xa67   :  { %3773 = vpow2.f32 %v924_v46  ;;  %v3704_v50 = vunpack.i.h.bf16 %v3702_v48  ;;  %v3703_v51 = vunpack.i.l.bf16 %v3702_v48  ;;  %3512 = vmatprep.subr.bf16.mxu1 %v3511_v36 }
 0xa68   :  { %3775 = vpow2.f32 %v926_v44 }
 0xa69   :  { %v3495_v41 = vpack.c.bf16 %v3704_v50, %v3703_v51  ;;  %v2965_v50 = vld [vmem:[%s4536_s4] ss:$0 sm:$0xff] }
 0xa6a   :  { %v608_v52 = vpop.permute.xlu1 %607  ;;  %3514 = vmatpush3.bf16.msra.mxu1 %v3511_v36 }
 0xa6b   :  { %613 = vst.msk [vmem:[#allocation2 + $0x8] sm:$0xff] %vm611_vm4, %v608_v52  ;;  %3496 = vmatprep.subr.bf16.mxu0 %v3495_v41 }
 0xa6c   :  { %3498 = vmatpush3.bf16.msra.mxu0 %v3495_v41  ;;  %v2966_v41 = vld [vmem:[%s4537_s5] ss:$0 sm:$0xff] }
 0xa6e   :  { %v817_v53 = vpop.permute.xlu1 %816 }
 0xa71   :  { %v3774_v54 = vpop.eup %3773 }
 0xa72   :  { %v819_v55 = vpop.permute.xlu1 %818  ;;  %v928_v56 = vsel %vm291_vm3, %v3774_v54, 0.0  ;;  %v3776_v57 = vpop.eup %3775 }
 0xa73   :  { %824 = vst.msk [vmem:[#allocation2 + $0x8] sm:$0xff] %vm822_vm5, %v819_v55  ;;  %929 = vadd.xlane.f32.xlu0 %v928_v56  ;;  %v931_v58 = vsel %vm291_vm3, %v3776_v57, 0.0 }
 0xa77   :  { %932 = vadd.xlane.f32.xlu0 %v931_v58  ;;  %v1322_v58 = vld [vmem:[%s4538_s12] sm:$0xff] }
 0xa8d   :  { %605 = vrot.lane.b32.xlu0 %v4079_v60, %s4552_s24  ;;  %v1038_v60 = vld [vmem:[%s4533_s8] sm:$0xff] }
 0xa8e   :  { %v3499_v6 = vpack.c.bf16 %v1039_v5, %v1038_v60  ;;  %v1328_v5 = vld [vmem:[%s4538_s12 + $0x30] sm:$0xff] }
 0xa90   :  { %3500 = vmatprep.subr.bf16.mxu0 %v3499_v6 }
 0xb00   :  { %v930_v59 = vpop.xlane.xlu0 %929 }
 0xb01   :  { %3777 = vrcp.f32 %v930_v59  ;;  %v1323_v59 = vld [vmem:[%s4538_s12 + $0x8] sm:$0xff] }
 0xb04   :  { %v933_v61 = vpop.xlane.xlu0 %932 }
 0xb05   :  { %3779 = vrcp.f32 %v933_v61  ;;  %v3515_v61 = vpack.c.bf16 %v1323_v59, %v1322_v58 }
 0xb08   :  { %v606_v62 = vpop.permute.xlu0 %605 }
 0xb09   :  { %612 = vst.msk [vmem:[#allocation2] sm:$0xff] %vm611_vm4, %v606_v62  ;;  %v1324_v62 = vld [vmem:[%s4538_s12 + $0x10] sm:$0xff] }
 0xb0a   :  { %823 = vst.msk [vmem:[#allocation2] sm:$0xff] %vm822_vm5, %v817_v53 }
 0xb0b   :  { %v3778_v63 = vpop.eup %3777 }
 0xb0c   :  { %v935_v2 = vmul.f32 %v3778_v63, %v3774_v54  ;;  %v1325_v63 = vld [vmem:[%s4538_s12 + $0x18] sm:$0xff] }
 0xb0e   :  { %3256 = vmatprep.mubr.msk.f32.mxu0 %vm291_vm3, %v935_v2  ;;  %v3519_v2 = vpack.c.bf16 %v1325_v63, %v1324_v62 }
 0xb0f   :  { %v3780_v3 = vpop.eup %3779 }
 0xb10   :  { %v937_v4 = vmul.f32 %v3780_v3, %v3776_v57  ;;  %v1326_v3 = vld [vmem:[%s4538_s12 + $0x20] sm:$0xff] }
 0xb12   :  { %3257 = vmatmul.mubr.msk.f32.vlgmr.msra.gmra.mrb[4].mxu0 %vm291_vm3, %v937_v4  ;;  %v1327_v4 = vld [vmem:[%s4538_s12 + $0x28] sm:$0xff] }
 0xb13   :  { %3502 = vmatpush3.bf16.msra.mxu0 %v3499_v6  ;;  %v3523_v60 = vpack.c.bf16 %v1327_v4, %v1326_v3  ;;  %v1329_v6 = vld [vmem:[%s4538_s12 + $0x38] sm:$0xff] }
 0xb14   :  { %3504 = vmatprep.subr.bf16.mxu0 %v3503_v9  ;;  %v3527_v7 = vpack.c.bf16 %v1329_v6, %v1328_v5 }
 0xb17   :  { %3506 = vmatpush3.bf16.msra.mxu0 %v3503_v9  ;;  %v1331_v9 = vld [vmem:[%s4538_s12 + $0x48] sm:$0xff] }
 0xb18   :  { %3516 = vmatprep.subr.bf16.mxu0 %v3515_v61 }
 0xbe5   :  { %v3258_v10 = vpop.f32.mrb[4].mxu0 }
 0xbe6   :  { %1029 = vrot.lane.b32.xlu1 %v3258_v10, %s4560_s23  ;;  %v1016_v11 = vpop.f32.mrb[5].mxu0  ;;  %v3531_v10 = vpack.c.bf16 %v1331_v9, %v1330_v8 }
 0xbe7   :  { %1027 = vrot.lane.b32.xlu0 %v1016_v11, %s4560_s23  ;;  %v1332_v11 = vld [vmem:[%s4538_s12 + $0x50] sm:$0xff] }
 0xc58   :  { %v1030_v12 = vpop.permute.xlu1 %1029 }
 0xc59   :  { %1035 = vst.msk [vmem:[#allocation2 + $0x8] sm:$0xff] %vm1033_vm6, %v1030_v12  ;;  %v1028_v13 = vpop.permute.xlu0 %1027  ;;  %v1333_v12 = vld [vmem:[%s4538_s12 + $0x58] sm:$0xff] }
 0xc5a   :  { %1034 = vst.msk [vmem:[#allocation2] sm:$0xff] %vm1033_vm6, %v1028_v13  ;;  %v3535_v13 = vpack.c.bf16 %v1333_v12, %v1332_v11 }
 0xc60   :  { %v1037_v15 = vld [vmem:[#allocation2 + $0x8] sm:$0xff] }
 0xc61   :  { %v1036_v14 = vld [vmem:[#allocation2] sm:$0xff] }
 0xc62   :  { %3267 = vmatprep.mubr.msk.f32.mxu0 %vm65_vm0, %v1036_v14  ;;  %v1334_v14 = vld [vmem:[%s4538_s12 + $0x60] sm:$0xff] }
 0xc63   :  { %3268 = vmatmul.mubr.msk.f32.vlgmr.msra.gmra.mrb[6].mxu0 %vm65_vm0, %v1037_v15  ;;  %v1335_v15 = vld [vmem:[%s4538_s12 + $0x68] sm:$0xff] }
 0xc64   :  { %3518 = vmatpush3.bf16.msra.mxu0 %v3515_v61 }
 0xc65   :  { %3520 = vmatprep.subr.bf16.mxu0 %v3519_v2 }
 0xc68   :  { %3522 = vmatpush3.bf16.msra.mxu0 %v3519_v2 }
 0xc69   :  { %3524 = vmatprep.subr.bf16.mxu0 %v3523_v60 }
 0xc6c   :  { %3526 = vmatpush3.bf16.msra.mxu0 %v3523_v60 }
 0xc6d   :  { %3528 = vmatprep.subr.bf16.mxu0 %v3527_v7 }
 0xc70   :  { %3530 = vmatpush3.bf16.msra.mxu0 %v3527_v7 }
 0xc71   :  { %3532 = vmatprep.subr.bf16.mxu0 %v3531_v10 }
 0xc74   :  { %3534 = vmatpush3.bf16.msra.mxu0 %v3531_v10 }
 0xc75   :  { %3536 = vmatprep.subr.bf16.mxu0 %v3535_v13 }
 0xc78   :  { %3538 = vmatpush3.bf16.msra.mxu0 %v3535_v13 }
 0xd36   :  { %v3269_v16 = vpop.f32.mrb[6].mxu0 }
 0xd37   :  { %v1127_v38 = vadd.f32 %v3269_v16, %v2962_v40  ;;  %v1121_v17 = vpop.f32.mrb[7].mxu0  ;;  %v1336_v16 = vld [vmem:[%s4538_s12 + $0x70] sm:$0xff] }
 0xd38   :  { %v1122_v18 = vadd.f32 %v2962_v40, %v1121_v17  ;;  %v3539_v40 = vpack.c.bf16 %v1335_v15, %v1334_v14 }
 0xd39   :  { %v4145_v19 = vadd.f32 %v1127_v38, %v3964_v1  ;;  %v1337_v38 = vld [vmem:[%s4538_s12 + $0x78] sm:$0xff] }
 0xd3a   :  { %v4148_v20 = vadd.f32 %v1122_v18, %v3959_v0  ;;  %3540 = vmatprep.subr.bf16.mxu0 %v3539_v40  ;;  %v3543_v17 = vpack.c.bf16 %v1337_v38, %v1336_v16  ;;  %v2967_v18 = vld [vmem:[%s4539_s11] ss:$0 sm:$0xff] }
 0xd3b   :  { %v1137_v21 = vsel %vm65_vm0, %v4145_v19, 0.0  ;;  %3542 = vmatpush3.bf16.msra.mxu0 %v3539_v40  ;;  %v2970_v16 = vld [vmem:[%s4540_s13] ss:$0 sm:$0xff] }
 0xd3c   :  { %1138 = vadd.xlane.f32.xlu1 %v1137_v21  ;;  %v1134_v22 = vsel %vm65_vm0, %v4148_v20, 0.0  ;;  %3544 = vmatprep.subr.bf16.mxu0 %v3543_v17 }
 0xd3d   :  { %1135 = vadd.xlane.f32.xlu0 %v1134_v22 }
 0xd3f   :  { %3546 = vmatpush3.bf16.msra.mxu0 %v3543_v17 }
 0xdc9   :  { %v1139_v23 = vpop.xlane.xlu1 %1138 }
 0xdca   :  { %v1141_v24 = vmul.f32 0.03125, %v1139_v23  ;;  %v1136_v25 = vpop.xlane.xlu0 %1135 }
 0xdcb   :  { %v1140_v26 = vmul.f32 0.03125, %v1136_v25 }
 0xdcc   :  { %v1143_v27 = vsub.f32 %v4145_v19, %v1141_v24 }
 0xdcd   :  { %v1142_v1 = vsub.f32 %v4148_v20, %v1140_v26 }
 0xdce   :  { %v1145_v29 = vmul.f32 %v1143_v27, %v1143_v27 }
 0xdcf   :  { %v1144_v28 = vmul.f32 %v1142_v1, %v1142_v1 }
 0xdd0   :  { %v1149_v30 = vsel %vm65_vm0, %v1145_v29, 0.0 }
 0xdd1   :  { %v1146_v0 = vsel %vm65_vm0, %v1144_v28, 0.0 }
 0xdd2   :  { %1147 = vadd.xlane.f32.xlu0 %v1146_v0 }
 0xdd6   :  { %1150 = vadd.xlane.f32.xlu0 %v1149_v30 }
 0xe5f   :  { %v1148_v37 = vpop.xlane.xlu0 %1147 }
 0xe60   :  { %v1152_v39 = vmul.f32 0.03125, %v1148_v37 }
 0xe62   :  { %v1154_v42 = vadd.f32 1e-06, %v1152_v39 }
 0xe63   :  { %v1151_v43 = vpop.xlane.xlu0 %1150 }
 0xe64   :  { %3781 = vrsqrt.f32 %v1154_v42  ;;  %v1153_v44 = vmul.f32 0.03125, %v1151_v43 }
 0xe66   :  { %v1155_v46 = vadd.f32 1e-06, %v1153_v44 }
 0xe68   :  { %3783 = vrsqrt.f32 %v1155_v46 }
 0xe6e   :  { %v3782_v48 = vpop.eup %3781 }
 0xe6f   :  { %v1158_v51 = vmul.f32 %v3782_v48, %v1142_v1 }
 0xe71   :  { %v1166_v52 = vmul.f32 %v2965_v50, %v1158_v51 }
 0xe72   :  { %v3784_v53 = vpop.eup %3783 }
 0xe73   :  { %v1159_v54 = vmul.f32 %v3784_v53, %v1143_v27  ;;  %v1174_v55 = vadd.f32 %v2966_v41, %v1166_v52 }
 0xe75   :  { %v1167_v56 = vmul.f32 %v2965_v50, %v1159_v54  ;;  %3278 = vmatprep.mubr.msk.f32.mxu1 %vm65_vm0, %v1174_v55 }
 0xe77   :  { %v1175_v57 = vadd.f32 %v2966_v41, %v1167_v56 }
 0xe79   :  { %3279 = vmatmul.mubr.msk.f32.vlgmr.msra.gmra.mrb[12].mxu1 %vm65_vm0, %v1175_v57 }
 0xf4c   :  { %v3280_v21 = vpop.f32.mrb[12].mxu1 }
 0xf4d   :  { %v1265_v22 = vadd.f32 %v3280_v21, %v2967_v18  ;;  %v1259_v23 = vpop.f32.mrb[13].mxu1 }
 0xf4e   :  { %v1260_v24 = vadd.f32 %v2967_v18, %v1259_v23 }
 0xf4f   :  { %v1269_v25 = vand.u32 2147483647, %v1265_v22  ;;  %vm1311_vm7 = vcmp.ge.f32.partialorder %v1265_v22, 0.0  ;;  %v1317_v13 = vmul.f32 0.5, %v1265_v22 }
 0xf50   :  { %v1268_v26 = vand.u32 2147483647, %v1260_v24  ;;  %vm1310_vm8 = vcmp.ge.f32.partialorder %v1260_v24, 0.0  ;;  %v1316_v11 = vmul.f32 0.5, %v1260_v24 }
 0xf51   :  { %v1271_v27 = vmul.f32 0.70710677, %v1269_v25 }
 0xf52   :  { %v1270_v1 = vmul.f32 0.70710677, %v1268_v26 }
 0xf53   :  { %v1273_v28 = vmul.f32 0.3275911, %v1271_v27  ;;  %v1299_v31 = vsub.f32 0.0, %v1271_v27 }
 0xf54   :  { %v1272_v0 = vmul.f32 0.3275911, %v1270_v1  ;;  %v1298_v32 = vsub.f32 0.0, %v1270_v1 }
 0xf55   :  { %v1275_v29 = vadd.f32 1.0, %v1273_v28  ;;  %v1301_v34 = vmul.f32 %v1299_v31, %v1271_v27  ;;  %v2975_v31 = vld [vmem:[%s4566_s20 + $0x20] sm:$0xff] }
 0xf56   :  { %v1274_v30 = vadd.f32 1.0, %v1272_v0  ;;  %v1300_v37 = vmul.f32 %v1298_v32, %v1270_v1  ;;  %v2976_v32 = vld [vmem:[%s4566_s20 + $0x28] sm:$0xff] }
 0xf57   :  { %3785 = vrcp.f32 %v1275_v29  ;;  %v1304_v43 = vmul.f32 1.442695, %v1301_v34  ;;  %v2977_v34 = vld [vmem:[%s4566_s20 + $0x30] sm:$0xff] }
 0xf58   :  { %3787 = vrcp.f32 %v1274_v30  ;;  %v1302_v48 = vmul.f32 1.442695, %v1300_v37 }
 0xf59   :  { %3789 = vpow2.f32 %v1304_v43 }
 0xf5a   :  { %3791 = vpow2.f32 %v1302_v48 }
 0xf61   :  { %v3786_v33 = vpop.eup %3785 }
 0xf62   :  { %v3788_v35 = vpop.eup %3787  ;;  %v1281_v36 = vmul.f32 1.0614054, %v3786_v33 }
 0xf63   :  { %v1280_v39 = vmul.f32 1.0614054, %v3788_v35  ;;  %v3790_v62 = vpop.eup %3789 }
 0xf64   :  { %v1283_v42 = vadd.f32 -1.4531521, %v1281_v36  ;;  %v3792_v2 = vpop.eup %3791 }
 0xf65   :  { %v1282_v44 = vadd.f32 -1.4531521, %v1280_v39 }
 0xf66   :  { %v1285_v46 = vmul.f32 %v3786_v33, %v1283_v42 }
 0xf67   :  { %v1284_v50 = vmul.f32 %v3788_v35, %v1282_v44 }
 0xf68   :  { %v1287_v51 = vadd.f32 1.4214138, %v1285_v46 }
 0xf69   :  { %v1286_v41 = vadd.f32 1.4214138, %v1284_v50  ;;  %v2973_v50 = vld [vmem:[%s4567_s28 + $0x1] ss:$0 sm:$0xff]  ;;  %s4578_s28 = smov 24  }
 0xf6a   :  { %v1289_v52 = vmul.f32 %v3786_v33, %v1287_v51 }
 0xf6b   :  { %v1288_v53 = vmul.f32 %v3788_v35, %v1286_v41 }
 0xf6c   :  { %v1291_v54 = vadd.f32 -0.28449672, %v1289_v52  ;;  %v2974_v52 = vld [vmem:[%s4530_s3 + $0x1] ss:$0 sm:$0xff]  ;;  %s4570_s3 = smov 64  }
 0xf6d   :  { %v1290_v55 = vadd.f32 -0.28449672, %v1288_v53 }
 0xf6e   :  { %v1293_v56 = vmul.f32 %v3786_v33, %v1291_v54 }
 0xf6f   :  { %v1292_v57 = vmul.f32 %v3788_v35, %v1290_v55 }
 0xf70   :  { %v1295_v58 = vadd.f32 0.2548296, %v1293_v56 }
 0xf71   :  { %v1294_v59 = vadd.f32 0.2548296, %v1292_v57 }
 0xf72   :  { %v1297_v61 = vmul.f32 %v3786_v33, %v1295_v58  ;;  %v3547_v33 = vpack.c.bf16 %v2976_v32, %v2975_v31  ;;  %v2980_v58 = vld [vmem:[%s4531_s7 + $0x1] ss:$0 sm:$0xff] }
 0xf73   :  { %v1296_v63 = vmul.f32 %v3788_v35, %v1294_v59  ;;  %v2978_v35 = vld [vmem:[%s4566_s20 + $0x38] sm:$0xff] }
 0xf74   :  { %v1307_v3 = vmul.f32 %v3790_v62, %v1297_v61  ;;  %3548 = vmatprep.subr.bf16.mxu1 %v3547_v33  ;;  %v3551_v36 = vpack.c.bf16 %v2978_v35, %v2977_v34 }
 0xf75   :  { %v1306_v4 = vmul.f32 %v3792_v2, %v1296_v63  ;;  %3550 = vmatpush3.bf16.msra.mxu1 %v3547_v33 }
 0xf76   :  { %v1309_v60 = vsub.f32 1.0, %v1307_v3  ;;  %3552 = vmatprep.subr.bf16.mxu1 %v3551_v36 }
 0xf77   :  { %v1308_v5 = vsub.f32 1.0, %v1306_v4 }
 0xf78   :  { %v1313_v6 = vsub.f32 0.0, %v1309_v60 }
 0xf79   :  { %v1312_v7 = vsub.f32 0.0, %v1308_v5  ;;  %3554 = vmatpush3.bf16.msra.mxu1 %v3551_v36 }
 0xf7a   :  { %v1315_v8 = vsel %vm1311_vm7, %v1309_v60, %v1313_v6 }
 0xf7b   :  { %v1319_v9 = vadd.f32 1.0, %v1315_v8  ;;  %v1314_v10 = vsel %vm1310_vm8, %v1308_v5, %v1312_v7 }
 0xf7c   :  { %v1318_v12 = vadd.f32 1.0, %v1314_v10 }
 0xf7d   :  { %v1321_v15 = vmul.f32 %v1319_v9, %v1317_v13 }
 0xf7e   :  { %v1320_v14 = vmul.f32 %v1318_v12, %v1316_v11 }
 0xf80   :  { %3313 = vmatprep.mubr.f32.mxu0 %v1320_v14 }
 0xf81   :  { %3314 = vmatmul.mubr.f32.vlgmr.msra.gmra.mrb[8].mxu0 %v1321_v15 }
0x1054   :  { %v3315_v40 = vpop.f32.mrb[8].mxu0 }
0x1055   :  { %v1414_v38 = vadd.f32 %v3315_v40, %v4145_v19  ;;  %v1404_v17 = vpop.f32.mrb[9].mxu0 }
0x1056   :  { %v1413_v18 = vadd.f32 %v1404_v17, %v4148_v20 }
0x1057   :  { %v4234_v21 = vadd.f32 %v2970_v16, %v1414_v38 }
0x1058   :  { %v4236_v23 = vadd.f32 %v2970_v16, %v1413_v18 }
0x1059   :  { %v1431_v22 = vsel %vm65_vm0, %v4234_v21, 0.0 }
0x105a   :  { %1432 = vadd.xlane.f32.xlu1 %v1431_v22  ;;  %v1428_v24 = vsel %vm65_vm0, %v4236_v23, 0.0 }
0x105b   :  { %1429 = vadd.xlane.f32.xlu0 %v1428_v24 }
0x10e7   :  { %v1433_v25 = vpop.xlane.xlu1 %1432 }
0x10e8   :  { %v1435_v26 = vmul.f32 0.03125, %v1433_v25  ;;  %v1430_v27 = vpop.xlane.xlu0 %1429 }
0x10e9   :  { %v1434_v1 = vmul.f32 0.03125, %v1430_v27 }
0x10ea   :  { %v1437_v19 = vsub.f32 %v4234_v21, %v1435_v26 }
0x10eb   :  { %v1436_v20 = vsub.f32 %v4236_v23, %v1434_v1 }
0x10ec   :  { %v1439_v28 = vmul.f32 %v1437_v19, %v1437_v19 }
0x10ed   :  { %v1438_v0 = vmul.f32 %v1436_v20, %v1436_v20 }
0x10ee   :  { %v1443_v29 = vsel %vm65_vm0, %v1439_v28, 0.0 }
0x10ef   :  { %1444 = vadd.xlane.f32.xlu1 %v1443_v29  ;;  %v1440_v30 = vsel %vm65_vm0, %v1438_v0, 0.0 }
0x10f0   :  { %1441 = vadd.xlane.f32.xlu0 %v1440_v30 }
0x117c   :  { %v1445_v37 = vpop.xlane.xlu1 %1444 }
0x117d   :  { %v1447_v39 = vmul.f32 0.03125, %v1445_v37  ;;  %v1442_v42 = vpop.xlane.xlu0 %1441 }
0x117e   :  { %v1446_v43 = vmul.f32 0.03125, %v1442_v42 }
0x117f   :  { %v1449_v44 = vadd.f32 1e-06, %v1447_v39 }
0x1180   :  { %v1448_v46 = vadd.f32 1e-06, %v1446_v43 }
0x1181   :  { %3793 = vrsqrt.f32 %v1449_v44 }
0x1182   :  { %3795 = vrsqrt.f32 %v1448_v46 }
0x118b   :  { %v3794_v48 = vpop.eup %3793 }
0x118c   :  { %v3796_v51 = vpop.eup %3795  ;;  %v1453_v41 = vmul.f32 %v3794_v48, %v1437_v19 }
0x118d   :  { %v1452_v53 = vmul.f32 %v3796_v51, %v1436_v20  ;;  %v4326_v51 = vld [vmem:[%s4532_s1 + $0x8] sm:$0xff] }
0x118e   :  { %v1461_v54 = vmul.f32 %v2973_v50, %v1453_v41 }
0x118f   :  { %v1460_v55 = vmul.f32 %v2973_v50, %v1452_v53  ;;  %v4332_v53 = vld [vmem:[%s4532_s1] sm:$0xff]  ;;  %s4571_s1 = smov 48  }
0x1190   :  { %v1469_v56 = vadd.f32 %v2974_v52, %v1461_v54 }
0x1191   :  { %v1468_v57 = vadd.f32 %v2974_v52, %v1460_v55 }
0x1193   :  { %3324 = vmatprep.mubr.msk.f32.mxu1 %vm65_vm0, %v1468_v57 }
0x1194   :  { %3325 = vmatmul.mubr.msk.f32.vlgmr.msra.gmra.mrb[14].mxu1 %vm65_vm0, %v1469_v56 }
0x1267   :  { %v3326_v59 = vpop.f32.mrb[14].mxu1 }
0x1268   :  { %v4269_v61 = vadd.f32 %v3326_v59, %v2980_v58  ;;  %v1555_v62 = vpop.f32.mrb[15].mxu1 }
0x1269   :  { %v4271_v63 = vadd.f32 %v2980_v58, %v1555_v62 }
0x126b   :  { %3331 = vmatprep.mubr.msk.f32.mxu1 %vm207_vm1, %v4271_v63  ;;  %v4277_v2 = vpack.i.bf16 %v4269_v61, %v4271_v63 }
0x126d   :  { %3706 = vrot.lane.b32.xlu0 %v4277_v2, %s3847_s6 }
0x1271   :  { %3716 = vrot.lane.b32.xlu0 %v4277_v2, %s3848_s21 }
0x1275   :  { %1764 = vrot.lane.b32.xlu0 %v4271_v63, %s3849_s22 }
0x1279   :  { %3721 = vrot.lane.b32.xlu0 %v4277_v2, %s3853_s30  ;;  %s4574_s30 = smov 104  }
0x127d   :  { %1974 = vrot.lane.b32.xlu0 %v4271_v63, %s3852_s29 }
0x12df   :  { %v3707_v3 = vpop.permute.xlu0 %3706 }
0x12e0   :  { %v3709_v4 = vunpack.i.h.bf16 %v3707_v3  ;;  %v3708_v60 = vunpack.i.l.bf16 %v3707_v3 }
0x12e2   :  { %v3555_v5 = vpack.c.bf16 %v3709_v4, %v3708_v60 }
0x12e3   :  { %v3717_v6 = vpop.permute.xlu0 %3716 }
0x12e4   :  { %3557 = vmatprep.subr.msk.bf16.mxu1 %vm4017_vm2, %v3555_v5  ;;  %v3719_v27 = vunpack.i.h.bf16 %v3717_v6 }
0x12e5   :  { %3560 = vmatpush3.bf16.xpose.msk.msra.mxu1 %vm4017_vm2, %v3555_v5 }
0x12e7   :  { %v1765_v7 = vpop.permute.xlu0 %1764 }
0x12eb   :  { %v3722_v8 = vpop.permute.xlu0 %3721 }
0x12ec   :  { %v3724_v9 = vunpack.i.h.bf16 %v3722_v8  ;;  %v3723_v10 = vunpack.i.l.bf16 %v3722_v8  ;;  %3332 = vmatmul.mubr.msk.f32.vlgmr.msra.gmra.mrb[16].mxu1 %vm207_vm1, %v4269_v61 }
0x12ee   :  { %v3575_v11 = vpack.c.bf16 %v3724_v9, %v3723_v10 }
0x12ef   :  { %v1975_v12 = vpop.permute.xlu0 %1974 }
0x12f0   :  { %3577 = vmatprep.subr.msk.bf16.mxu0 %vm4017_vm2, %v3575_v11  ;;  %3359 = vmatprep.mubr.msk.f32.mxu0 %vm207_vm1, %v1975_v12 }
0x12f1   :  { %3580 = vmatpush3.bf16.xpose.msk.msra.mxu0 %vm4017_vm2, %v3575_v11 }
0x13bf   :  { %v3333_v13 = vpop.f32.mrb[16].mxu1 }
0x13c0   :  { %v1644_v14 = vpop.f32.mrb[17].mxu1  ;;  %v1650_v40 = vadd.f32 %v3333_v13, %v4035_v49 }
0x13c1   :  { %v1645_v15 = vadd.f32 %v1644_v14, %v4030_v47  ;;  %v3718_v47 = vunpack.i.l.bf16 %v3717_v6 }
0x13c2   :  { %v1656_v38 = vsel %vm291_vm3, %v1650_v40, -inf }
0x13c3   :  { %v1653_v16 = vsel %vm291_vm3, %v1645_v15, -inf  ;;  %v3565_v28 = vpack.c.bf16 %v3719_v27, %v3718_v47 }
0x13c4   :  { %1654 = vmax.xlane.f32.xlu1 %v1653_v16 }
0x13c8   :  { %1657 = vmax.xlane.f32.xlu1 %v1656_v38 }
0x13d9   :  { %3711 = vrot.lane.b32.xlu1 %v4277_v2, %s4570_s3 }
0x1451   :  { %v1655_v17 = vpop.xlane.xlu1 %1654 }
0x1452   :  { %v1659_v18 = vsub.f32 %v1645_v15, %v1655_v17 }
0x1454   :  { %v1661_v25 = vmul.f32 1.442695, %v1659_v18 }
0x1455   :  { %v1658_v22 = vpop.xlane.xlu1 %1657 }
0x1456   :  { %v1660_v24 = vsub.f32 %v1650_v40, %v1658_v22 }
0x1458   :  { %v1663_v26 = vmul.f32 1.442695, %v1660_v24 }
0x1459   :  { %v3712_v1 = vpop.permute.xlu1 %3711 }
0x145a   :  { %3797 = vpow2.f32 %v1663_v26  ;;  %v3714_v49 = vunpack.i.h.bf16 %v3712_v1  ;;  %v3713_v19 = vunpack.i.l.bf16 %v3712_v1 }
0x145b   :  { %3799 = vpow2.f32 %v1661_v25 }
0x145c   :  { %v3561_v20 = vpack.c.bf16 %v3714_v49, %v3713_v19 }
0x145e   :  { %3562 = vmatprep.subr.bf16.mxu1 %v3561_v20 }
0x145f   :  { %3564 = vmatpush3.bf16.msra.mxu1 %v3561_v20 }
0x1460   :  { %3567 = vmatprep.subr.msk.bf16.mxu1 %vm4017_vm2, %v3565_v28 }
0x1464   :  { %v3798_v0 = vpop.eup %3797 }
0x1465   :  { %v1668_v29 = vsel %vm291_vm3, %v3798_v0, 0.0  ;;  %v3800_v30 = vpop.eup %3799 }
0x1466   :  { %1669 = vadd.xlane.f32.xlu1 %v1668_v29  ;;  %v1665_v31 = vsel %vm291_vm3, %v3800_v30, 0.0 }
0x146a   :  { %1666 = vadd.xlane.f32.xlu1 %v1665_v31 }
0x147b   :  { %1766 = vrot.lane.b32.xlu1 %v4269_v61, %s3849_s22  ;;  %s4572_s22 = smov 56  }
0x147f   :  { %1976 = vrot.lane.b32.xlu1 %v4269_v61, %s3852_s29  ;;  %s4573_s29 = smov 72  }
0x14f3   :  { %v1670_v32 = vpop.xlane.xlu1 %1669 }
0x14f4   :  { %3801 = vrcp.f32 %v1670_v32 }
0x14f7   :  { %v1667_v33 = vpop.xlane.xlu1 %1666 }
0x14f8   :  { %3803 = vrcp.f32 %v1667_v33 }
0x14fb   :  { %v1767_v34 = vpop.permute.xlu1 %1766 }
0x14fe   :  { %v3802_v36 = vpop.eup %3801 }
0x14ff   :  { %v1977_v35 = vpop.permute.xlu1 %1976  ;;  %v1674_v42 = vmul.f32 %v3802_v36, %v3798_v0 }
0x1500   :  { %3360 = vmatmul.mubr.msk.f32.vlgmr.msra.gmra.mrb[10].mxu0 %vm207_vm1, %v1977_v35 }
0x1502   :  { %v3804_v37 = vpop.eup %3803 }
0x1503   :  { %v1672_v39 = vmul.f32 %v3804_v37, %v3800_v30 }
0x1505   :  { %3338 = vmatprep.mubr.msk.f32.mxu1 %vm291_vm3, %v1672_v39 }
0x1506   :  { %3339 = vmatmul.mubr.msk.f32.vlgmr.msra.gmra.mrb[18].mxu1 %vm291_vm3, %v1674_v42 }
0x1507   :  { %3570 = vmatpush3.bf16.xpose.msk.msra.mxu1 %vm4017_vm2, %v3565_v28  ;;  %3345 = vmatprep.mubr.msk.f32.mxu1 %vm207_vm1, %v1765_v7 }
0x150e   :  { %3346 = vmatmul.mubr.msk.f32.vlgmr.msra.gmra.mrb[20].mxu1 %vm207_vm1, %v1767_v34 }
0x15d3   :  { %v3361_v43 = vpop.f32.mrb[10].mxu0 }
0x15d4   :  { %v2056_v44 = vpop.f32.mrb[11].mxu0  ;;  %v2062_v58 = vadd.f32 %v4326_v51, %v3361_v43 }
0x15d5   :  { %v2057_v56 = vadd.f32 %v4332_v53, %v2056_v44 }
0x15d6   :  { %v2068_v62 = vsel %vm291_vm3, %v2062_v58, -inf }
0x15d7   :  { %v2065_v59 = vsel %vm291_vm3, %v2057_v56, -inf }
0x15d9   :  { %v3340_v46 = vpop.f32.mrb[18].mxu1 }
0x15da   :  { %1763 = vst.msk [vmem:[#allocation2 + $0x8] sm:$0xff] %vm207_vm1, %v3340_v46  ;;  %v1753_v48 = vpop.f32.mrb[19].mxu1 }
0x15db   :  { %1762 = vst.msk [vmem:[#allocation2] sm:$0xff] %vm207_vm1, %v1753_v48 }
0x15e1   :  { %v3347_v50 = vpop.f32.mrb[20].mxu1 }
0x15e2   :  { %v1852_v41 = vadd.f32 %v4326_v51, %v3347_v50  ;;  %v1846_v52 = vpop.f32.mrb[21].mxu1 }
0x15e3   :  { %v1847_v54 = vadd.f32 %v4332_v53, %v1846_v52 }
0x15e4   :  { %v1858_v55 = vsel %vm291_vm3, %v1852_v41, -inf }
0x15e5   :  { %1859 = vmax.xlane.f32.xlu1 %v1858_v55  ;;  %v1855_v57 = vsel %vm291_vm3, %v1847_v54, -inf }
0x15e6   :  { %1856 = vmax.xlane.f32.xlu0 %v1855_v57 }
0x15ea   :  { %2066 = vmax.xlane.f32.xlu0 %v2065_v59 }
0x15ee   :  { %2069 = vmax.xlane.f32.xlu0 %v2068_v62 }
0x1672   :  { %v1860_v60 = vpop.xlane.xlu1 %1859 }
0x1673   :  { %v1857_v3 = vpop.xlane.xlu0 %1856  ;;  %v1862_v7 = vsub.f32 %v1852_v41, %v1860_v60 }
0x1674   :  { %v1861_v4 = vsub.f32 %v1847_v54, %v1857_v3 }
0x1675   :  { %v1865_v12 = vmul.f32 1.442695, %v1862_v7 }
0x1676   :  { %v1863_v8 = vmul.f32 1.442695, %v1861_v4 }
0x1677   :  { %v2067_v5 = vpop.xlane.xlu0 %2066 }
0x1678   :  { %v2071_v6 = vsub.f32 %v2057_v56, %v2067_v5 }
0x167a   :  { %v2073_v9 = vmul.f32 1.442695, %v2071_v6 }
0x167b   :  { %v2070_v10 = vpop.xlane.xlu0 %2069 }
0x167c   :  { %3805 = vpow2.f32 %v2073_v9  ;;  %v2072_v11 = vsub.f32 %v2062_v58, %v2070_v10 }
0x167d   :  { %3807 = vpow2.f32 %v1863_v8 }
0x167e   :  { %v2075_v13 = vmul.f32 1.442695, %v2072_v11 }
0x1680   :  { %3809 = vpow2.f32 %v2075_v13 }
0x1681   :  { %3811 = vpow2.f32 %v1865_v12 }
0x1686   :  { %v3806_v14 = vpop.eup %3805 }
0x1687   :  { %v2077_v15 = vsel %vm291_vm3, %v3806_v14, 0.0  ;;  %v3808_v40 = vpop.eup %3807 }
0x1688   :  { %2078 = vadd.xlane.f32.xlu0 %v2077_v15  ;;  %v1867_v38 = vsel %vm291_vm3, %v3808_v40, 0.0 }
0x168a   :  { %v3810_v16 = vpop.eup %3809 }
0x168b   :  { %v2080_v17 = vsel %vm291_vm3, %v3810_v16, 0.0  ;;  %v3812_v18 = vpop.eup %3811 }
0x168c   :  { %1868 = vadd.xlane.f32.xlu0 %v1867_v38  ;;  %2081 = vadd.xlane.f32.xlu1 %v2080_v17  ;;  %v1870_v22 = vsel %vm291_vm3, %v3812_v18, 0.0 }
0x1690   :  { %1871 = vadd.xlane.f32.xlu1 %v1870_v22  ;;  %v3008_v22 = vld [vmem:[%s4533_s8 + $0x28] sm:$0xff] }
0x16a1   :  { %3731 = vrot.lane.b32.xlu1 %v4277_v2, %s4571_s1 }
0x16a2   :  { %3726 = vrot.lane.b32.xlu0 %v4277_v2, %s4572_s22 }
0x16a5   :  { %3736 = vrot.lane.b32.xlu1 %v4277_v2, %s4573_s29 }
0x16a6   :  { %2186 = vrot.lane.b32.xlu0 %v4269_v61, %s4574_s30 }
0x16a9   :  { %2184 = vrot.lane.b32.xlu1 %v4271_v63, %s4574_s30 }
0x1715   :  { %v2079_v24 = vpop.xlane.xlu0 %2078 }
0x1719   :  { %v2082_v25 = vpop.xlane.xlu1 %2081  ;;  %v1869_v26 = vpop.xlane.xlu0 %1868 }
0x171a   :  { %3813 = vrcp.f32 %v1869_v26  ;;  %v3010_v26 = vld [vmem:[%s4533_s8 + $0x38] sm:$0xff] }
0x171b   :  { %3815 = vrcp.f32 %v2079_v24 }
0x171d   :  { %v1872_v27 = vpop.xlane.xlu1 %1871  ;;  %v3727_v1 = vpop.permute.xlu0 %3726 }
0x171e   :  { %3817 = vrcp.f32 %v1872_v27  ;;  %v3729_v47 = vunpack.i.h.bf16 %v3727_v1  ;;  %v3728_v49 = vunpack.i.l.bf16 %v3727_v1 }
0x171f   :  { %3819 = vrcp.f32 %v2082_v25  ;;  %v3009_v25 = vld [vmem:[%s4533_s8 + $0x30] sm:$0xff] }
0x1720   :  { %v3571_v19 = vpack.c.bf16 %v3729_v47, %v3728_v49  ;;  %v3599_v27 = vpack.c.bf16 %v3010_v26, %v3009_v25  ;;  %v3037_v26 = vld [vmem:[%s4538_s12 + $0xd0] sm:$0xff] }
0x1721   :  { %v3732_v20 = vpop.permute.xlu1 %3731  ;;  %v2187_v44 = vpop.permute.xlu0 %2186 }
0x1722   :  { %v3734_v28 = vunpack.i.h.bf16 %v3732_v20  ;;  %v3733_v0 = vunpack.i.l.bf16 %v3732_v20  ;;  %3572 = vmatprep.subr.bf16.mxu1 %v3571_v19 }
0x1723   :  { %3574 = vmatpush3.bf16.msra.mxu1 %v3571_v19 }
0x1724   :  { %v3581_v61 = vpack.c.bf16 %v3734_v28, %v3733_v0  ;;  %v3814_v29 = vpop.eup %3813  ;;  %v3012_v0 = vld [vmem:[%s4534_s9 + $0x1] ss:$0 sm:$0xff] }
0x1725   :  { %v3737_v63 = vpop.permute.xlu1 %3736  ;;  %v1874_v30 = vmul.f32 %v3814_v29, %v3808_v40  ;;  %v3816_v31 = vpop.eup %3815 }
0x1726   :  { %3582 = vmatprep.subr.bf16.mxu1 %v3581_v61  ;;  %v3739_v32 = vunpack.i.h.bf16 %v3737_v63  ;;  %v3738_v33 = vunpack.i.l.bf16 %v3737_v63  ;;  %v2084_v37 = vmul.f32 %v3816_v31, %v3806_v14 }
0x1727   :  { %3352 = vmatprep.mubr.msk.f32.mxu1 %vm291_vm3, %v1874_v30 }
0x1728   :  { %v3818_v34 = vpop.eup %3817  ;;  %v3585_v39 = vpack.c.bf16 %v3739_v32, %v3738_v33 }
0x1729   :  { %v1876_v35 = vmul.f32 %v3818_v34, %v3812_v18  ;;  %v3820_v36 = vpop.eup %3819  ;;  %v2185_v43 = vpop.permute.xlu1 %2184  ;;  %v3007_v18 = vld [vmem:[%s4533_s8 + $0x20] sm:$0xff] }
0x172a   :  { %v2086_v42 = vmul.f32 %v3820_v36, %v3810_v16  ;;  %v3595_v24 = vpack.c.bf16 %v3008_v22, %v3007_v18  ;;  %v3035_v22 = vld [vmem:[%s4538_s12 + $0xc0] sm:$0xff] }
0x172b   :  { %3353 = vmatmul.mubr.msk.f32.vlgmr.msra.gmra.mrb[22].mxu1 %vm291_vm3, %v1876_v35 }
0x172c   :  { %3584 = vmatpush3.bf16.msra.mxu1 %v3581_v61  ;;  %3366 = vmatprep.mubr.msk.f32.mxu1 %vm291_vm3, %v2084_v37 }
0x172d   :  { %3587 = vmatprep.subr.msk.bf16.mxu1 %vm4017_vm2, %v3585_v39 }
0x172f   :  { %3367 = vmatmul.mubr.msk.f32.vlgmr.msra.gmra.mrb[24].mxu1 %vm291_vm3, %v2086_v42 }
0x1730   :  { %3373 = vmatprep.mubr.msk.f32.mxu1 %vm207_vm1, %v2185_v43 }
0x1735   :  { %3590 = vmatpush3.bf16.xpose.msk.msra.mxu1 %vm4017_vm2, %v3585_v39 }
0x173c   :  { %3374 = vmatmul.mubr.msk.f32.vlgmr.msra.gmra.mrb[26].mxu1 %vm207_vm1, %v2187_v44 }
0x17fe   :  { %v3354_v46 = vpop.f32.mrb[22].mxu1 }
0x17ff   :  { %v1955_v48 = vpop.f32.mrb[23].mxu1 }
0x1802   :  { %v3368_v50 = vpop.f32.mrb[24].mxu1 }
0x1803   :  { %v2165_v41 = vpop.f32.mrb[25].mxu1 }
0x180f   :  { %v3375_v52 = vpop.f32.mrb[26].mxu1 }
0x1810   :  { %v2272_v54 = vadd.f32 %v4326_v51, %v3375_v52  ;;  %v2266_v55 = vpop.f32.mrb[27].mxu1  ;;  %v3021_v52 = vld [vmem:[%s4535_s10 + $0x30] sm:$0xff] }
0x1811   :  { %v2267_v56 = vadd.f32 %v4332_v53, %v2266_v55 }
0x1812   :  { %v2278_v57 = vsel %vm291_vm3, %v2272_v54, -inf }
0x1813   :  { %2279 = vmax.xlane.f32.xlu0 %v2278_v57  ;;  %v2275_v58 = vsel %vm291_vm3, %v2267_v56, -inf }
0x1814   :  { %2276 = vmax.xlane.f32.xlu1 %v2275_v58 }
0x1825   :  { %3741 = vrot.lane.b32.xlu1 %v4277_v2, %s4575_s25 }
0x1829   :  { %1968 = vrot.lane.b32.xlu1 %v3354_v46, %s4576_s26 }
0x182d   :  { %2176 = vrot.lane.b32.xlu1 %v2165_v41, %s4577_s27 }
0x1831   :  { %2178 = vrot.lane.b32.xlu1 %v3368_v50, %s4577_s27  ;;  %v3020_v50 = vld [vmem:[%s4535_s10 + $0x28] sm:$0xff] }
0x18a0   :  { %v2280_v45 = vpop.xlane.xlu0 %2279 }
0x18a1   :  { %v2282_v51 = vsub.f32 %v2272_v54, %v2280_v45  ;;  %v2277_v59 = vpop.xlane.xlu1 %2276  ;;  %v3022_v54 = vld [vmem:[%s4535_s10 + $0x38] sm:$0xff] }
0x18a2   :  { %v2281_v62 = vsub.f32 %v2267_v56, %v2277_v59  ;;  %v3607_v55 = vpack.c.bf16 %v3022_v54, %v3021_v52 }
0x18a3   :  { %v2285_v53 = vmul.f32 1.442695, %v2282_v51 }
0x18a4   :  { %v2283_v3 = vmul.f32 1.442695, %v2281_v62 }
0x18a5   :  { %v3742_v4 = vpop.permute.xlu1 %3741 }
0x18a6   :  { %3821 = vpow2.f32 %v2283_v3  ;;  %v3744_v60 = vunpack.i.h.bf16 %v3742_v4  ;;  %v3743_v5 = vunpack.i.l.bf16 %v3742_v4  ;;  %v3018_v4 = vld [vmem:[%s4537_s5 + $0x1] ss:$0 sm:$0xff] }
0x18a7   :  { %3823 = vpow2.f32 %v2285_v53  ;;  %v3017_v53 = vld [vmem:[%s4536_s4 + $0x1] ss:$0 sm:$0xff] }
0x18a8   :  { %v3591_v6 = vpack.c.bf16 %v3744_v60, %v3743_v5 }
0x18a9   :  { %v1969_v7 = vpop.permute.xlu1 %1968 }
0x18aa   :  { %1973 = vst.msk [vmem:[#allocation2 + $0x8] sm:$0xff] %vm611_vm4, %v1969_v7  ;;  %3592 = vmatprep.subr.bf16.mxu0 %v3591_v6 }
0x18ab   :  { %3594 = vmatpush3.bf16.msra.mxu0 %v3591_v6 }
0x18ac   :  { %3596 = vmatprep.subr.bf16.mxu0 %v3595_v24 }
0x18ad   :  { %v2177_v2 = vpop.permute.xlu1 %2176 }
0x18b0   :  { %v3822_v8 = vpop.eup %3821 }
0x18b1   :  { %v2179_v9 = vpop.permute.xlu1 %2178  ;;  %v2287_v10 = vsel %vm291_vm3, %v3822_v8, 0.0  ;;  %v3824_v11 = vpop.eup %3823 }
0x18b2   :  { %2183 = vst.msk [vmem:[#allocation2 + $0x8] sm:$0xff] %vm822_vm5, %v2179_v9  ;;  %2288 = vadd.xlane.f32.xlu0 %v2287_v10  ;;  %v2290_v12 = vsel %vm291_vm3, %v3824_v11, 0.0  ;;  %v3027_v9 = vld [vmem:[%s4538_s12 + $0x80] sm:$0xff]  ;;  %v3028_v10 = vld [vmem:[%s4538_s12 + $0x88] sm:$0xff] }
0x18b6   :  { %2291 = vadd.xlane.f32.xlu0 %v2290_v12  ;;  %v3029_v12 = vld [vmem:[%s4538_s12 + $0x90] sm:$0xff] }
0x18cc   :  { %1966 = vrot.lane.b32.xlu0 %v1955_v48, %s4576_s26  ;;  %v3019_v48 = vld [vmem:[%s4535_s10 + $0x20] sm:$0xff] }
0x18cd   :  { %v3603_v41 = vpack.c.bf16 %v3020_v50, %v3019_v48 }
0x18cf   :  { %3604 = vmatprep.subr.bf16.mxu1 %v3603_v41 }
0x18d0   :  { %3606 = vmatpush3.bf16.msra.mxu1 %v3603_v41 }
0x18d1   :  { %3608 = vmatprep.subr.bf16.mxu1 %v3607_v55 }
0x18d4   :  { %3610 = vmatpush3.bf16.msra.mxu1 %v3607_v55 }
0x193f   :  { %v2289_v13 = vpop.xlane.xlu0 %2288 }
0x1940   :  { %3825 = vrcp.f32 %v2289_v13  ;;  %v3030_v13 = vld [vmem:[%s4538_s12 + $0x98] sm:$0xff] }
0x1943   :  { %v2292_v14 = vpop.xlane.xlu0 %2291 }
0x1944   :  { %3827 = vrcp.f32 %v2292_v14  ;;  %v3615_v14 = vpack.c.bf16 %v3030_v13, %v3029_v12 }
0x1947   :  { %v1967_v15 = vpop.permute.xlu0 %1966 }
0x1948   :  { %1972 = vst.msk [vmem:[#allocation2] sm:$0xff] %vm611_vm4, %v1967_v15  ;;  %v3031_v15 = vld [vmem:[%s4538_s12 + $0xa0] sm:$0xff] }
0x1949   :  { %2182 = vst.msk [vmem:[#allocation2] sm:$0xff] %vm822_vm5, %v2177_v2 }
0x194a   :  { %v3826_v40 = vpop.eup %3825 }
0x194b   :  { %v2294_v16 = vmul.f32 %v3826_v40, %v3822_v8  ;;  %v3032_v40 = vld [vmem:[%s4538_s12 + $0xa8] sm:$0xff] }
0x194d   :  { %3380 = vmatprep.mubr.msk.f32.mxu0 %vm291_vm3, %v2294_v16  ;;  %v3619_v16 = vpack.c.bf16 %v3032_v40, %v3031_v15 }
0x194e   :  { %v3828_v38 = vpop.eup %3827 }
0x194f   :  { %v2296_v17 = vmul.f32 %v3828_v38, %v3824_v11  ;;  %v3611_v11 = vpack.c.bf16 %v3028_v10, %v3027_v9  ;;  %v3033_v38 = vld [vmem:[%s4538_s12 + $0xb0] sm:$0xff] }
0x1951   :  { %3381 = vmatmul.mubr.msk.f32.vlgmr.msra.gmra.mrb[12].mxu0 %vm291_vm3, %v2296_v17  ;;  %v3034_v17 = vld [vmem:[%s4538_s12 + $0xb8] sm:$0xff] }
0x1952   :  { %3598 = vmatpush3.bf16.msra.mxu0 %v3595_v24  ;;  %v3623_v18 = vpack.c.bf16 %v3034_v17, %v3033_v38  ;;  %v3036_v24 = vld [vmem:[%s4538_s12 + $0xc8] sm:$0xff] }
0x1953   :  { %3600 = vmatprep.subr.bf16.mxu0 %v3599_v27  ;;  %v3627_v25 = vpack.c.bf16 %v3036_v24, %v3035_v22 }
0x1956   :  { %3602 = vmatpush3.bf16.msra.mxu0 %v3599_v27  ;;  %v3038_v27 = vld [vmem:[%s4538_s12 + $0xd8] sm:$0xff] }
0x1957   :  { %3612 = vmatprep.subr.bf16.mxu0 %v3611_v11 }
0x1a24   :  { %v3382_v1 = vpop.f32.mrb[12].mxu0 }
0x1a25   :  { %2388 = vrot.lane.b32.xlu1 %v3382_v1, %s4578_s28  ;;  %v2375_v47 = vpop.f32.mrb[13].mxu0  ;;  %v3631_v1 = vpack.c.bf16 %v3038_v27, %v3037_v26 }
0x1a26   :  { %2386 = vrot.lane.b32.xlu0 %v2375_v47, %s4578_s28  ;;  %v3039_v47 = vld [vmem:[%s4538_s12 + $0xe0] sm:$0xff] }
0x1a97   :  { %v2389_v49 = vpop.permute.xlu1 %2388 }
0x1a98   :  { %2393 = vst.msk [vmem:[#allocation2 + $0x8] sm:$0xff] %vm1033_vm6, %v2389_v49  ;;  %v2387_v19 = vpop.permute.xlu0 %2386  ;;  %v3040_v49 = vld [vmem:[%s4538_s12 + $0xe8] sm:$0xff] }
0x1a99   :  { %2392 = vst.msk [vmem:[#allocation2] sm:$0xff] %vm1033_vm6, %v2387_v19  ;;  %v3635_v19 = vpack.c.bf16 %v3040_v49, %v3039_v47  ;;  %v3044_v47 = vld [vmem:[%s4540_s13 + $0x1] ss:$0 sm:$0xff] }
0x1a9f   :  { %v2395_v28 = vld [vmem:[#allocation2 + $0x8] sm:$0xff] }
0x1aa0   :  { %v2394_v20 = vld [vmem:[#allocation2] sm:$0xff] }
0x1aa1   :  { %3391 = vmatprep.mubr.msk.f32.mxu0 %vm65_vm0, %v2394_v20  ;;  %v3041_v20 = vld [vmem:[%s4538_s12 + $0xf0] sm:$0xff] }
0x1aa2   :  { %3392 = vmatmul.mubr.msk.f32.vlgmr.msra.gmra.mrb[14].mxu0 %vm65_vm0, %v2395_v28  ;;  %v3042_v28 = vld [vmem:[%s4538_s12 + $0xf8] sm:$0xff] }
0x1aa3   :  { %3614 = vmatpush3.bf16.msra.mxu0 %v3611_v11 }
0x1aa4   :  { %3616 = vmatprep.subr.bf16.mxu0 %v3615_v14 }
0x1aa7   :  { %3618 = vmatpush3.bf16.msra.mxu0 %v3615_v14 }
0x1aa8   :  { %3620 = vmatprep.subr.bf16.mxu0 %v3619_v16 }
0x1aab   :  { %3622 = vmatpush3.bf16.msra.mxu0 %v3619_v16 }
0x1aac   :  { %3624 = vmatprep.subr.bf16.mxu0 %v3623_v18 }
0x1aaf   :  { %3626 = vmatpush3.bf16.msra.mxu0 %v3623_v18 }
0x1ab0   :  { %3628 = vmatprep.subr.bf16.mxu0 %v3627_v25 }
0x1ab3   :  { %3630 = vmatpush3.bf16.msra.mxu0 %v3627_v25 }
0x1ab4   :  { %3632 = vmatprep.subr.bf16.mxu0 %v3631_v1 }
0x1ab7   :  { %3634 = vmatpush3.bf16.msra.mxu0 %v3631_v1 }
0x1ab8   :  { %3636 = vmatprep.subr.bf16.mxu0 %v3635_v19 }
0x1abb   :  { %3638 = vmatpush3.bf16.msra.mxu0 %v3635_v19 }
0x1b75   :  { %v3393_v61 = vpop.f32.mrb[14].mxu0 }
0x1b76   :  { %v2487_v29 = vadd.f32 %v3393_v61, %v3012_v0  ;;  %v2481_v63 = vpop.f32.mrb[15].mxu0  ;;  %v3024_v61 = vld [vmem:[%s4539_s11 + $0x1] ss:$0 sm:$0xff] }
0x1b77   :  { %v2482_v30 = vadd.f32 %v3012_v0, %v2481_v63  ;;  %v3639_v0 = vpack.c.bf16 %v3042_v28, %v3041_v20 }
0x1b78   :  { %v4405_v31 = vadd.f32 %v2487_v29, %v4234_v21 }
0x1b79   :  { %v4408_v32 = vadd.f32 %v2482_v30, %v4236_v23  ;;  %3640 = vmatprep.subr.bf16.mxu0 %v3639_v0 }
0x1b7a   :  { %v2499_v33 = vsel %vm65_vm0, %v4405_v31, 0.0  ;;  %3642 = vmatpush3.bf16.msra.mxu0 %v3639_v0 }
0x1b7b   :  { %2500 = vadd.xlane.f32.xlu1 %v2499_v33  ;;  %v2496_v34 = vsel %vm65_vm0, %v4408_v32, 0.0 }
0x1b7c   :  { %2497 = vadd.xlane.f32.xlu0 %v2496_v34 }
0x1c08   :  { %v2501_v35 = vpop.xlane.xlu1 %2500 }
0x1c09   :  { %v2503_v36 = vmul.f32 0.03125, %v2501_v35  ;;  %v2498_v37 = vpop.xlane.xlu0 %2497 }
0x1c0a   :  { %v2502_v39 = vmul.f32 0.03125, %v2498_v37 }
0x1c0b   :  { %v2505_v42 = vsub.f32 %v4405_v31, %v2503_v36 }
0x1c0c   :  { %v2504_v21 = vsub.f32 %v4408_v32, %v2502_v39 }
0x1c0d   :  { %v2507_v44 = vmul.f32 %v2505_v42, %v2505_v42 }
0x1c0e   :  { %v2506_v43 = vmul.f32 %v2504_v21, %v2504_v21 }
0x1c0f   :  { %v2511_v46 = vsel %vm65_vm0, %v2507_v44, 0.0 }
0x1c10   :  { %v2508_v23 = vsel %vm65_vm0, %v2506_v43, 0.0 }
0x1c11   :  { %2509 = vadd.xlane.f32.xlu0 %v2508_v23 }
0x1c15   :  { %2512 = vadd.xlane.f32.xlu0 %v2511_v46 }
0x1c9e   :  { %v2510_v56 = vpop.xlane.xlu0 %2509 }
0x1c9f   :  { %v2514_v57 = vmul.f32 0.03125, %v2510_v56 }
0x1ca1   :  { %v2516_v58 = vadd.f32 1e-06, %v2514_v57 }
0x1ca2   :  { %v2513_v45 = vpop.xlane.xlu0 %2512 }
0x1ca3   :  { %3829 = vrsqrt.f32 %v2516_v58  ;;  %v2515_v51 = vmul.f32 0.03125, %v2513_v45 }
0x1ca5   :  { %v2517_v59 = vadd.f32 1e-06, %v2515_v51 }
0x1ca7   :  { %3831 = vrsqrt.f32 %v2517_v59 }
0x1cad   :  { %v3830_v62 = vpop.eup %3829 }
0x1cae   :  { %v2520_v3 = vmul.f32 %v3830_v62, %v2504_v21 }
0x1cb0   :  { %v2528_v60 = vmul.f32 %v3017_v53, %v2520_v3 }
0x1cb1   :  { %v3832_v5 = vpop.eup %3831 }
0x1cb2   :  { %v2521_v6 = vmul.f32 %v3832_v5, %v2505_v42  ;;  %v2536_v7 = vadd.f32 %v3018_v4, %v2528_v60 }
0x1cb4   :  { %v2529_v2 = vmul.f32 %v3017_v53, %v2521_v6  ;;  %3402 = vmatprep.mubr.msk.f32.mxu1 %vm65_vm0, %v2536_v7 }
0x1cb6   :  { %v2537_v8 = vadd.f32 %v3018_v4, %v2529_v2 }
0x1cb8   :  { %3403 = vmatmul.mubr.msk.f32.vlgmr.msra.gmra.mrb[28].mxu1 %vm65_vm0, %v2537_v8 }
0x1d8b   :  { %v3404_v29 = vpop.f32.mrb[28].mxu1 }
0x1d8c   :  { %v2629_v63 = vadd.f32 %v3404_v29, %v3024_v61  ;;  %v2623_v30 = vpop.f32.mrb[29].mxu1 }
0x1d8d   :  { %v2624_v33 = vadd.f32 %v3024_v61, %v2623_v30 }
0x1d8e   :  { %v2633_v34 = vand.u32 2147483647, %v2629_v63  ;;  %vm2675_vm9 = vcmp.ge.f32.partialorder %v2629_v63, 0.0  ;;  %v2681_v25 = vmul.f32 0.5, %v2629_v63 }
0x1d8f   :  { %v2632_v35 = vand.u32 2147483647, %v2624_v33  ;;  %vm2674_vm10 = vcmp.ge.f32.partialorder %v2624_v33, 0.0  ;;  %v2680_v22 = vmul.f32 0.5, %v2624_v33 }
0x1d90   :  { %v2635_v36 = vmul.f32 0.70710677, %v2633_v34 }
0x1d91   :  { %v2634_v37 = vmul.f32 0.70710677, %v2632_v35 }
0x1d92   :  { %v2637_v39 = vmul.f32 0.3275911, %v2635_v36  ;;  %v2663_v23 = vsub.f32 0.0, %v2635_v36 }
0x1d93   :  { %v2636_v42 = vmul.f32 0.3275911, %v2634_v37  ;;  %v2662_v44 = vsub.f32 0.0, %v2634_v37 }
0x1d94   :  { %v2639_v21 = vadd.f32 1.0, %v2637_v39  ;;  %v2665_v48 = vmul.f32 %v2663_v23, %v2635_v36  ;;  %v2836_v23 = vld [vmem:[%s4541_s16 + $0x10] sm:$0xff] }
0x1d95   :  { %v2638_v43 = vadd.f32 1.0, %v2636_v42  ;;  %v2664_v52 = vmul.f32 %v2662_v44, %v2634_v37  ;;  %v2834_v42 = vld [vmem:[%s4541_s16] sm:$0xff]  ;;  %v2837_v44 = vld [vmem:[%s4541_s16 + $0x18] sm:$0xff] }
0x1d96   :  { %3833 = vrcp.f32 %v2639_v21  ;;  %v2668_v56 = vmul.f32 1.442695, %v2665_v48  ;;  %v2835_v21 = vld [vmem:[%s4541_s16 + $0x8] sm:$0xff] }
0x1d97   :  { %3835 = vrcp.f32 %v2638_v43  ;;  %v2666_v45 = vmul.f32 1.442695, %v2664_v52  ;;  %v3643_v43 = vpack.c.bf16 %v2835_v21, %v2834_v42 }
0x1d98   :  { %3837 = vpow2.f32 %v2668_v56 }
0x1d99   :  { %3839 = vpow2.f32 %v2666_v45  ;;  %3644 = vmatprep.subr.bf16.mxu1 %v3643_v43 }
0x1d9a   :  { %3646 = vmatpush3.bf16.msra.mxu1 %v3643_v43 }
0x1da0   :  { %v3834_v46 = vpop.eup %3833 }
0x1da1   :  { %v3836_v50 = vpop.eup %3835  ;;  %v2645_v41 = vmul.f32 1.0614054, %v3834_v46 }
0x1da2   :  { %v2644_v54 = vmul.f32 1.0614054, %v3836_v50  ;;  %v3838_v9 = vpop.eup %3837 }
0x1da3   :  { %v2647_v55 = vadd.f32 -1.4531521, %v2645_v41  ;;  %v3840_v11 = vpop.eup %3839 }
0x1da4   :  { %v2646_v57 = vadd.f32 -1.4531521, %v2644_v54 }
0x1da5   :  { %v2649_v58 = vmul.f32 %v3834_v46, %v2647_v55 }
0x1da6   :  { %v2648_v51 = vmul.f32 %v3836_v50, %v2646_v57  ;;  %v3045_v57 = vld [vmem:[%s4542_s14] ss:$0 sm:$0xff] }
0x1da7   :  { %v2651_v59 = vadd.f32 1.4214138, %v2649_v58 }
0x1da8   :  { %v2650_v62 = vadd.f32 1.4214138, %v2648_v51 }
0x1da9   :  { %v2653_v53 = vmul.f32 %v3834_v46, %v2651_v59  ;;  %v3046_v59 = vld [vmem:[%s4543_s15] ss:$0 sm:$0xff] }
0x1daa   :  { %v2652_v3 = vmul.f32 %v3836_v50, %v2650_v62 }
0x1dab   :  { %v2655_v4 = vadd.f32 -0.28449672, %v2653_v53 }
0x1dac   :  { %v2654_v60 = vadd.f32 -0.28449672, %v2652_v3 }
0x1dad   :  { %v2657_v5 = vmul.f32 %v3834_v46, %v2655_v4 }
0x1dae   :  { %v2656_v6 = vmul.f32 %v3836_v50, %v2654_v60  ;;  %v3047_v60 = vld [vmem:[%s4544_s17] ss:$0 sm:$0xff] }
0x1daf   :  { %v2659_v7 = vadd.f32 0.2548296, %v2657_v5 }
0x1db0   :  { %v2658_v2 = vadd.f32 0.2548296, %v2656_v6 }
0x1db1   :  { %v2661_v8 = vmul.f32 %v3834_v46, %v2659_v7  ;;  %v3647_v46 = vpack.c.bf16 %v2837_v44, %v2836_v23 }
0x1db2   :  { %v2660_v10 = vmul.f32 %v3836_v50, %v2658_v2 }
0x1db3   :  { %v2671_v12 = vmul.f32 %v3838_v9, %v2661_v8  ;;  %3648 = vmatprep.subr.bf16.mxu1 %v3647_v46 }
0x1db4   :  { %v2670_v13 = vmul.f32 %v3840_v11, %v2660_v10  ;;  %3650 = vmatpush3.bf16.msra.mxu1 %v3647_v46 }
0x1db5   :  { %v2673_v14 = vsub.f32 1.0, %v2671_v12 }
0x1db6   :  { %v2672_v15 = vsub.f32 1.0, %v2670_v13 }
0x1db7   :  { %v2677_v40 = vsub.f32 0.0, %v2673_v14 }
0x1db8   :  { %v2676_v16 = vsub.f32 0.0, %v2672_v15 }
0x1db9   :  { %v2679_v38 = vsel %vm2675_vm9, %v2673_v14, %v2677_v40 }
0x1dba   :  { %v2683_v17 = vadd.f32 1.0, %v2679_v38  ;;  %v2678_v18 = vsel %vm2674_vm10, %v2672_v15, %v2676_v16 }
0x1dbb   :  { %v2682_v24 = vadd.f32 1.0, %v2678_v18 }
0x1dbc   :  { %v2685_v27 = vmul.f32 %v2683_v17, %v2681_v25 }
0x1dbd   :  { %v2684_v26 = vmul.f32 %v2682_v24, %v2680_v22 }
0x1dbf   :  { %3437 = vmatprep.mubr.f32.mxu0 %v2684_v26 }
0x1dc0   :  { %3438 = vmatmul.mubr.f32.vlgmr.msra.gmra.mrb[16].mxu0 %v2685_v27 }
0x1e93   :  { %v3439_v1 = vpop.f32.mrb[16].mxu0 }
0x1e94   :  { %v2779_v49 = vadd.f32 %v3439_v1, %v4405_v31  ;;  %v2769_v19 = vpop.f32.mrb[17].mxu0 }
0x1e95   :  { %v2778_v20 = vadd.f32 %v2769_v19, %v4408_v32 }
0x1e96   :  { %v2789_v28 = vadd.f32 %v3044_v47, %v2779_v49 }
0x1e97   :  { %v2788_v0 = vadd.f32 %v3044_v47, %v2778_v20 }
0x1e98   :  { %v2795_v61 = vsel %vm65_vm0, %v2789_v28, 0.0 }
0x1e99   :  { %2796 = vadd.xlane.f32.xlu1 %v2795_v61  ;;  %v2792_v29 = vsel %vm65_vm0, %v2788_v0, 0.0 }
0x1e9a   :  { %2793 = vadd.xlane.f32.xlu0 %v2792_v29 }
0x1f26   :  { %v2797_v63 = vpop.xlane.xlu1 %2796 }
0x1f27   :  { %v2799_v30 = vmul.f32 0.03125, %v2797_v63  ;;  %v2794_v33 = vpop.xlane.xlu0 %2793 }
0x1f28   :  { %v2798_v34 = vmul.f32 0.03125, %v2794_v33 }
0x1f29   :  { %v2801_v35 = vsub.f32 %v2789_v28, %v2799_v30 }
0x1f2a   :  { %v2800_v36 = vsub.f32 %v2788_v0, %v2798_v34 }
0x1f2b   :  { %v2803_v37 = vmul.f32 %v2801_v35, %v2801_v35 }
0x1f2c   :  { %v2802_v39 = vmul.f32 %v2800_v36, %v2800_v36 }
0x1f2d   :  { %v2807_v31 = vsel %vm65_vm0, %v2803_v37, 0.0 }
0x1f2e   :  { %2808 = vadd.xlane.f32.xlu1 %v2807_v31  ;;  %v2804_v32 = vsel %vm65_vm0, %v2802_v39, 0.0 }
0x1f2f   :  { %2805 = vadd.xlane.f32.xlu0 %v2804_v32 }
0x1fbb   :  { %v2809_v48 = vpop.xlane.xlu1 %2808 }
0x1fbc   :  { %v2811_v50 = vmul.f32 0.03125, %v2809_v48  ;;  %v2806_v41 = vpop.xlane.xlu0 %2805 }
0x1fbd   :  { %v2810_v52 = vmul.f32 0.03125, %v2806_v41 }
0x1fbe   :  { %v2813_v54 = vadd.f32 1e-06, %v2811_v50 }
0x1fbf   :  { %v2812_v55 = vadd.f32 1e-06, %v2810_v52 }
0x1fc0   :  { %3841 = vrsqrt.f32 %v2813_v54 }
0x1fc1   :  { %3843 = vrsqrt.f32 %v2812_v55 }
0x1fca   :  { %v3842_v56 = vpop.eup %3841 }
0x1fcb   :  { %v3844_v58 = vpop.eup %3843  ;;  %v2817_v45 = vmul.f32 %v3842_v56, %v2801_v35 }
0x1fcc   :  { %v2816_v51 = vmul.f32 %v3844_v58, %v2800_v36 }
0x1fcd   :  { %v2825_v62 = vmul.f32 %v3045_v57, %v2817_v45 }
0x1fce   :  { %v2824_v53 = vmul.f32 %v3045_v57, %v2816_v51 }
0x1fcf   :  { %v2833_v4 = vadd.f32 %v3046_v59, %v2825_v62 }
0x1fd0   :  { %v2832_v3 = vadd.f32 %v3046_v59, %v2824_v53 }
0x1fd2   :  { %3448 = vmatprep.mubr.msk.f32.mxu1 %vm65_vm0, %v2832_v3 }
0x1fd3   :  { %3449 = vmatmul.mubr.msk.f32.vlgmr.msra.gmra.mrb[30].mxu1 %vm65_vm0, %v2833_v4 }
0x20a6   :  { %v3450_v5 = vpop.f32.mrb[30].mxu1 }
0x20a7   :  { %v2923_v6 = vadd.f32 %v3450_v5, %v3047_v60  ;;  %v2917_v7 = vpop.f32.mrb[31].mxu1 }
0x20a8   :  { %v2918_v2 = vadd.f32 %v3047_v60, %v2917_v7 }
0x20a9   :  { %2928 = vst.msk [vmem:[%s4545_s18 + $0x8] sm:$0xff] %vm2926_vm11, %v2923_v6 }
0x20aa   :  { %2927 = vst.msk [vmem:[%s4545_s18] sm:$0xff] %vm2926_vm11, %v2918_v2 }

</bundles_post_ra>
